<compile_context>
chip_gen: v5e
topology: v5e:2x2
jax: 0.10.0
libtpu: 0.0.40
codegen_flags: <defaults>
</compile_context>

<pallas_src>
import functools
from math import sqrt

import jax
import jax.numpy as jnp
import numpy as np
from jax import lax
from jax.experimental import pallas as pl
from jax.experimental.pallas import tpu as pltpu

EPS = 1e-5
_MASK_VALUE = -1e30


# --------------------------------------------------------------------------
# Small helpers: tiling, VMEM limit, feature probes
# --------------------------------------------------------------------------
def _ceil_to(n, q):
    return (n + q - 1) // q * q


def _pick_tile(n, target, quantum=128):
    """Largest multiple of `quantum` <= target that divides n (else full n)."""
    if n <= target:
        return n
    t = (target // quantum) * quantum
    while t >= quantum:
        if n % t == 0:
            return t
        t -= quantum
    return n


@functools.lru_cache(maxsize=None)
def _vmem_limit_bytes():
    """Explicit scoped-VMEM budget (review: defaults of 16/32 MiB are too small)."""
    default = 64 * 1024 * 1024
    try:
        info = pltpu.get_tpu_info()
        cap = getattr(info, "vmem_capacity_bytes", None)
        if cap:
            return max(32 * 1024 * 1024,
                       min(int(cap) * 7 // 8, 112 * 1024 * 1024))
    except Exception:
        pass
    return default


_BUFFERED_OK = None


def _buffered_supported():
    """Probe pipeline_mode=pl.Buffered(1) once; fall back if unsupported."""
    global _BUFFERED_OK
    if _BUFFERED_OK is None:
        try:
            mode = pl.Buffered(1)

            def _probe(x_ref, o_ref):
                o_ref[...] = x_ref[...] * 2.0

            f = pl.pallas_call(
                _probe,
                out_shape=jax.ShapeDtypeStruct((16, 128), jnp.float32),
                grid=(2,),
                in_specs=[pl.BlockSpec((8, 128), lambda i: (0, 0),
                                       pipeline_mode=mode)],
                out_specs=pl.BlockSpec((8, 128), lambda i: (i, 0)),
            )
            jax.block_until_ready(f(jnp.ones((8, 128), jnp.float32)))
            _BUFFERED_OK = True
        except Exception:
            _BUFFERED_OK = False
    return _BUFFERED_OK


def _const_spec(block_shape, index_map):
    """BlockSpec for a grid-invariant operand: single-buffered when supported."""
    if _buffered_supported():
        return pl.BlockSpec(block_shape, index_map, pipeline_mode=pl.Buffered(1))
    return pl.BlockSpec(block_shape, index_map)


_TRANSPOSE_OK = None


def _transpose_supported():
    """Probe an in-kernel (s,h,d)->(h,s,d) transpose; fall back to slice/stack."""
    global _TRANSPOSE_OK
    if _TRANSPOSE_OK is None:
        def _probe(x_ref, o_ref):
            o_ref[...] = jnp.swapaxes(x_ref[...], 0, 1)

        try:
            x = jnp.arange(8 * 16 * 8, dtype=jnp.float32).reshape(8, 16, 8)
            f = pl.pallas_call(
                _probe, out_shape=jax.ShapeDtypeStruct((16, 8, 8), jnp.float32))
            r = jax.block_until_ready(f(x))
            _TRANSPOSE_OK = bool(jnp.array_equal(r, jnp.swapaxes(x, 0, 1)))
        except Exception:
            _TRANSPOSE_OK = False
    return _TRANSPOSE_OK


# --------------------------------------------------------------------------
# Kernels
# --------------------------------------------------------------------------
def _qkv_rope_kernel(x_ref, g1_ref, wqkv_ref, cos_ref, sin_ref,
                     q_ref, k_ref, v_ref, *, use_transpose):
    """RMSNorm1 + fused QKV projection + RoPE + head split for one row tile."""
    tr, D = x_ref.shape
    H, _, dk = q_ref.shape
    dk2 = dk // 2
    cdt = wqkv_ref.dtype

    x = x_ref[...].astype(jnp.float32)
    xn = x * lax.rsqrt(jnp.mean(x * x, axis=-1, keepdims=True) + EPS)
    xn = (xn * g1_ref[...]).astype(cdt)

    # Q/K columns pre-permuted to rotate-half order, Q pre-scaled by 1/sqrt(dk).
    qkv = jnp.dot(xn, wqkv_ref[...], preferred_element_type=jnp.float32)
    q2d, k2d, v2d = qkv[:, :D], qkv[:, D:2 * D], qkv[:, 2 * D:]

    def to_heads(t):                                # (tr, D) -> (H, tr, dk)
        if use_transpose:
            return jnp.swapaxes(t.reshape(tr, H, dk), 0, 1)
        return jnp.stack([t[:, h * dk:(h + 1) * dk] for h in range(H)], axis=0)

    cos = cos_ref[...]
    sin = sin_ref[...]                              # first half pre-negated

    def rope(t):
        if dk % 128 == 0:
            rot = pltpu.roll(t, shift=dk2, axis=-1)    # XLU slot, ~free
        else:
            rot = jnp.concatenate([t[..., dk2:], t[..., :dk2]], axis=-1)
        return t * cos + rot * sin

    q_ref[...] = rope(to_heads(q2d)).astype(q_ref.dtype)
    k_ref[...] = rope(to_heads(k2d)).astype(k_ref.dtype)
    v_ref[...] = to_heads(v2d).astype(v_ref.dtype)


def _flash_attn_kernel(x_ref, q_ref, k_ref, v_ref, wo_ref, o_ref,
                       m_s, l_s, acc_s, *, merge_transpose):
    """Causal flash attention (online softmax) + output projection + residual."""
    H, tq, dk = q_ref.shape
    tkv = k_ref.shape[1]
    i = pl.program_id(1)
    j = pl.program_id(2)
    q_start = i * tq
    kv_start = j * tkv

    @pl.when(j == 0)
    def _init():
        m_s[...] = jnp.full_like(m_s, _MASK_VALUE)
        l_s[...] = jnp.zeros_like(l_s)
        acc_s[...] = jnp.zeros_like(acc_s)

    # Skip kv tiles that lie entirely above the causal diagonal.
    @pl.when(kv_start <= q_start + tq - 1)
    def _update():
        s = jnp.einsum("hqd,hkd->hqk", q_ref[...], k_ref[...],
                       preferred_element_type=jnp.float32)        # (H, tq, tkv)
        rows = q_start + lax.broadcasted_iota(jnp.int32, (tq, tkv), 0)
        cols = kv_start + lax.broadcasted_iota(jnp.int32, (tq, tkv), 1)
        s = jnp.where(cols <= rows, s, _MASK_VALUE)

        m_prev = m_s[...]
        m_new = jnp.maximum(m_prev, jnp.max(s, axis=-1, keepdims=True))
        alpha = jnp.exp(m_prev - m_new)
        p = jnp.exp(s - m_new)
        l_s[...] = alpha * l_s[...] + jnp.sum(p, axis=-1, keepdims=True)
        acc_s[...] = alpha * acc_s[...] + jnp.einsum(
            "hqk,hkd->hqd", p.astype(v_ref.dtype), v_ref[...],
            preferred_element_type=jnp.float32)
        m_s[...] = m_new

    @pl.when(j == pl.num_programs(2) - 1)
    def _finalize():
        ctx = acc_s[...] / l_s[...]                               # exact divide
        if merge_transpose:
            ctx_sd = jnp.swapaxes(ctx, 0, 1).reshape(tq, H * dk)
        else:
            ctx_sd = jnp.concatenate([ctx[h] for h in range(H)], axis=-1)
        attn = jnp.dot(ctx_sd.astype(wo_ref.dtype), wo_ref[...],
                       preferred_element_type=jnp.float32)
        o_ref[...] = (x_ref[...].astype(jnp.float32) + attn).astype(o_ref.dtype)


def _ffn_kernel(x_ref, g_ref, w1_ref, w3_ref, w2_ref, o_ref, xn_s, acc_s):
    """RMSNorm2 + SwiGLU FFN + residual; d_ff tiled on the inner axis."""
    j = pl.program_id(1)

    @pl.when(j == 0)
    def _init():
        x = x_ref[...].astype(jnp.float32)
        xn = x * lax.rsqrt(jnp.mean(x * x, axis=-1, keepdims=True) + EPS)
        xn_s[...] = (xn * g_ref[...]).astype(xn_s.dtype)
        acc_s[...] = jnp.zeros_like(acc_s)

    xn = xn_s[...]
    h1 = jnp.dot(xn, w1_ref[...], preferred_element_type=jnp.float32)
    h3 = jnp.dot(xn, w3_ref[...], preferred_element_type=jnp.float32)
    gated = (h1 * jax.nn.sigmoid(h1) * h3).astype(w2_ref.dtype)
    acc_s[...] += jnp.dot(gated, w2_ref[...], preferred_element_type=jnp.float32)

    @pl.when(j == pl.num_programs(1) - 1)
    def _write():
        o_ref[...] = (x_ref[...].astype(jnp.float32)
                      + acc_s[...]).astype(o_ref.dtype)


def _lm_head_kernel(x_ref, g_ref, w_ref, o_ref, xn_s):
    """Final RMSNorm (once per row tile) + LM head (vocab-tiled, lane-dense)."""
    @pl.when(pl.program_id(1) == 0)
    def _norm():
        x = x_ref[...].astype(jnp.float32)
        xn = x * lax.rsqrt(jnp.mean(x * x, axis=-1, keepdims=True) + EPS)
        xn_s[...] = (xn * g_ref[...]).astype(xn_s.dtype)

    o_ref[...] = jnp.dot(xn_s[...], w_ref[...],
                         preferred_element_type=jnp.float32).astype(o_ref.dtype)


# --------------------------------------------------------------------------
# Wrappers
# --------------------------------------------------------------------------
def qkv_rope(x, g1, wqkv_t, cos, sin, num_heads, *, row_tile=256):
    B, S, D = x.shape
    H = num_heads
    dk = D // H
    cdt = wqkv_t.dtype
    tr = _pick_tile(S, row_tile, quantum=8)
    kernel = functools.partial(_qkv_rope_kernel,
                               use_transpose=_transpose_supported())
    out_shape = tuple(jax.ShapeDtypeStruct((B, H, S, dk), cdt) for _ in range(3))
    out_specs = tuple(pl.BlockSpec((None, H, tr, dk), lambda b, r: (b, 0, r, 0))
                      for _ in range(3))
    return pl.pallas_call(
        kernel,
        out_shape=out_shape,
        grid=(B, S // tr),
        in_specs=[
            pl.BlockSpec((None, tr, D), lambda b, r: (b, r, 0)),     # x
            _const_spec((1, D), lambda b, r: (0, 0)),                # g1
            _const_spec((D, 3 * D), lambda b, r: (0, 0)),            # wqkv_t
            pl.BlockSpec((tr, dk), lambda b, r: (r, 0)),             # cos
            pl.BlockSpec((tr, dk), lambda b, r: (r, 0)),             # sin
        ],
        out_specs=out_specs,
        compiler_params=pltpu.CompilerParams(
            dimension_semantics=("parallel", "parallel"),
            vmem_limit_bytes=_vmem_limit_bytes()),
    )(x, g1, wqkv_t, cos, sin)


def flash_attention(x, q, k, v, wo_t, *, q_tile=256, kv_tile=256):
    B, H, S, dk = q.shape
    D = H * dk
    tq = _pick_tile(S, q_tile, quantum=8)
    tkv = _pick_tile(S, kv_tile, quantum=8)
    kernel = functools.partial(_flash_attn_kernel,
                               merge_transpose=_transpose_supported())
    return pl.pallas_call(
        kernel,
        out_shape=jax.ShapeDtypeStruct((B, S, D), x.dtype),
        grid=(B, S // tq, S // tkv),
        in_specs=[
            pl.BlockSpec((None, tq, D), lambda b, i, j: (b, i, 0)),        # residual
            pl.BlockSpec((None, H, tq, dk), lambda b, i, j: (b, 0, i, 0)),  # q
            pl.BlockSpec((None, H, tkv, dk), lambda b, i, j: (b, 0, j, 0)),  # k
            pl.BlockSpec((None, H, tkv, dk), lambda b, i, j: (b, 0, j, 0)),  # v
            _const_spec((D, D), lambda b, i, j: (0, 0)),                   # wo_t
        ],
        out_specs=pl.BlockSpec((None, tq, D), lambda b, i, j: (b, i, 0)),
        scratch_shapes=[
            pltpu.VMEM((H, tq, 1), jnp.float32),    # running max
            pltpu.VMEM((H, tq, 1), jnp.float32),    # running denom
            pltpu.VMEM((H, tq, dk), jnp.float32),   # running PV accumulator
        ],
        compiler_params=pltpu.CompilerParams(
            dimension_semantics=("parallel", "parallel", "arbitrary"),
            vmem_limit_bytes=_vmem_limit_bytes()),
    )(x, q, k, v, wo_t)


def swiglu_ffn(x2, g2, w1_t, w3_t, w2_t, *, row_tile=512, ff_tile=256):
    B, S, D = x2.shape
    N = B * S
    d_ff = w1_t.shape[1]
    tr = _pick_tile(N, row_tile, quantum=8)
    tff = _pick_tile(d_ff, ff_tile, quantum=128)
    cdt = w1_t.dtype
    out = pl.pallas_call(
        _ffn_kernel,
        out_shape=jax.ShapeDtypeStruct((N, D), x2.dtype),
        grid=(N // tr, d_ff // tff),
        in_specs=[
            pl.BlockSpec((tr, D), lambda i, j: (i, 0)),      # x2 rows
            _const_spec((1, D), lambda i, j: (0, 0)),        # g2
            pl.BlockSpec((D, tff), lambda i, j: (0, j)),     # w1_t tile
            pl.BlockSpec((D, tff), lambda i, j: (0, j)),     # w3_t tile
            pl.BlockSpec((tff, D), lambda i, j: (j, 0)),     # w2_t tile
        ],
        out_specs=pl.BlockSpec((tr, D), lambda i, j: (i, 0)),
        scratch_shapes=[
            pltpu.VMEM((tr, D), cdt),          # RMSNorm2(x2) * g2
            pltpu.VMEM((tr, D), jnp.float32),  # FFN accumulator
        ],
        compiler_params=pltpu.CompilerParams(
            dimension_semantics=("parallel", "arbitrary"),
            vmem_limit_bytes=_vmem_limit_bytes()),
    )(x2.reshape(N, D), g2, w1_t, w3_t, w2_t)
    return out.reshape(B, S, D)


def lm_head(x, g, wout_t, vocab_size, *, row_tile=1024, vocab_tile=512):
    B, S, D = x.shape
    N = B * S
    Vp = wout_t.shape[1]
    tN = _pick_tile(N, row_tile, quantum=8)
    tV = _pick_tile(Vp, vocab_tile, quantum=128)
    cdt = wout_t.dtype
    out = pl.pallas_call(
        _lm_head_kernel,
        out_shape=jax.ShapeDtypeStruct((N, Vp), jnp.float32),
        grid=(N // tN, Vp // tV),
        in_specs=[
            pl.BlockSpec((tN, D), lambda i, j: (i, 0)),
            _const_spec((1, D), lambda i, j: (0, 0)),
            pl.BlockSpec((D, tV), lambda i, j: (0, j)),
        ],
        out_specs=pl.BlockSpec((tN, tV), lambda i, j: (i, j)),
        scratch_shapes=[pltpu.VMEM((tN, D), cdt)],
        compiler_params=pltpu.CompilerParams(
            dimension_semantics=("parallel", "arbitrary"),
            vmem_limit_bytes=_vmem_limit_bytes()),
    )(x.reshape(N, D), g, wout_t)
    return out[:, :vocab_size].reshape(B, S, vocab_size)


def prepare_params(params, num_heads, compute_dtype=jnp.bfloat16):
    """One-time weight preparation (hoisted out of the forward path):
    permute Q/K columns interleaved->rotate-half, fold 1/sqrt(d_k) into Q,
    transpose every weight to (in, out), pad d_ff/vocab to multiples of 128,
    and cast to the MXU compute dtype."""
    D = params["token_embedding"].shape[1]
    d_k = D // num_heads
    perm_head = np.concatenate([np.arange(0, d_k, 2), np.arange(1, d_k, 2)])
    perm_qk = np.concatenate([h * d_k + perm_head for h in range(num_heads)])
    perm = np.concatenate([perm_qk, D + perm_qk, 2 * D + np.arange(D)])
    row_scale = np.concatenate([np.full(D, 1.0 / sqrt(d_k), np.float32),
                                np.ones(2 * D, np.float32)])[:, None]

    V = params["output_embedding"].shape[0]
    V_pad = _ceil_to(V, 128)
    wout_t = jnp.transpose(params["output_embedding"]).astype(compute_dtype)
    if V_pad > V:
        wout_t = jnp.pad(wout_t, ((0, 0), (0, V_pad - V)))

    prep = {
        "token_embedding": params["token_embedding"],
        "ln_final": params["ln_final"].reshape(1, D).astype(jnp.float32),
        "wout_t": wout_t,
        "vocab_size": V,
        "layers": [],
    }
    for layer in params["layers"]:
        d_ff = layer["w1"].shape[0]
        pad_ff = _ceil_to(d_ff, 128) - d_ff
        wqkv = layer["w_qkv"][perm] * row_scale
        w1_t = jnp.transpose(layer["w1"]).astype(compute_dtype)
        w3_t = jnp.transpose(layer["w3"]).astype(compute_dtype)
        w2_t = jnp.transpose(layer["w2"]).astype(compute_dtype)
        if pad_ff:
            w1_t = jnp.pad(w1_t, ((0, 0), (0, pad_ff)))
            w3_t = jnp.pad(w3_t, ((0, 0), (0, pad_ff)))
            w2_t = jnp.pad(w2_t, ((0, pad_ff), (0, 0)))
        prep["layers"].append({
            "wqkv_t": jnp.transpose(wqkv).astype(compute_dtype),
            "wo_t": jnp.transpose(layer["w_o"]).astype(compute_dtype),
            "w1_t": w1_t, "w3_t": w3_t, "w2_t": w2_t,
            "g1": layer["g1"].reshape(1, D).astype(jnp.float32),
            "g2": layer["g2"].reshape(1, D).astype(jnp.float32),
        })
    return prep


def transformer_lm_forward(tokens, prep, num_heads, rope_theta):
    # TODO(synk): token-embedding gather stays in plain JAX (pure indexing, no MXU work).
    x = jnp.take(prep["token_embedding"], tokens, axis=0).astype(jnp.float32)
    B, S, D = x.shape
    d_k = D // num_heads

    pos = np.arange(S, dtype=np.float32)
    freqs = 1.0 / (rope_theta ** (np.arange(0, d_k, 2)[: d_k // 2]
                                  .astype(np.float32) / d_k))
    ang = pos[:, None] * freqs[None, :]
    cos = jnp.asarray(np.concatenate([np.cos(ang), np.cos(ang)], -1), jnp.float32)
    # rotate-half sign folded into the first half of sin
    sin = jnp.asarray(np.concatenate([-np.sin(ang), np.sin(ang)], -1), jnp.float32)

    for layer in prep["layers"]:
        q, k, v = qkv_rope(x, layer["g1"], layer["wqkv_t"], cos, sin, num_heads)
        x = flash_attention(x, q, k, v, layer["wo_t"])
        x = swiglu_ffn(x, layer["g2"], layer["w1_t"], layer["w3_t"], layer["w2_t"])
    return lm_head(x, prep["ln_final"], prep["wout_t"], prep["vocab_size"])


# --------------------------------------------------------------------------
# Deterministic parameter init (matches module __init__ shapes / init scheme)
# --------------------------------------------------------------------------
def init_params(key, vocab_size, num_layers, d_model, num_heads, d_ff=None):
    if d_ff is None:
        d_ff = (int(8 / 3 * d_model) + 63) // 64 * 64

    def trunc(k, shape, std):
        return std * jax.random.truncated_normal(k, -3.0, 3.0, shape, jnp.float32)

    keys = jax.random.split(key, 2 + num_layers)
    params = {
        "token_embedding": trunc(keys[0], (vocab_size, d_model), 1.0),
        "output_embedding": trunc(keys[1], (vocab_size, d_model),
                                  sqrt(2.0 / (d_model + vocab_size))),
        "ln_final": jnp.ones((d_model,), jnp.float32),
        "layers": [],
    }
    for l in range(num_layers):
        lk = jax.random.split(keys[2 + l], 5)
        std_qkv = sqrt(2.0 / (d_model + 3 * d_model))
        std_o = sqrt(2.0 / (d_model + d_model))
        std_ff = sqrt(2.0 / (d_model + d_ff))
        params["layers"].append({
            "w_qkv": trunc(lk[0], (3 * d_model, d_model), std_qkv),
            "w_o": trunc(lk[1], (d_model, d_model), std_o),
            "w1": trunc(lk[2], (d_ff, d_model), std_ff),
            "w2": trunc(lk[3], (d_model, d_ff), std_ff),
            "w3": trunc(lk[4], (d_ff, d_model), std_ff),
            "g1": jnp.ones((d_model,), jnp.float32),
            "g2": jnp.ones((d_model,), jnp.float32),
        })
    return params


# --------------------------------------------------------------------------
# Pure NumPy (float64) reference of the original PyTorch semantics
# --------------------------------------------------------------------------
def _np_rmsnorm(x, g):
    rms = np.sqrt(np.mean(x * x, axis=-1, keepdims=True) + EPS)
    return x / rms * g


def _np_rope(x, cos, sin):
    xe, xo = x[..., 0::2], x[..., 1::2]
    re = xe * cos - xo * sin
    ro = xe * sin + xo * cos
    return np.stack([re, ro], axis=-1).reshape(x.shape)


def _np_softmax(x, axis):
    m = np.max(x, axis=axis, keepdims=True)
    e = np.exp(x - m)
    return e / np.sum(e, axis=axis, keepdims=True)


def _np_block(x, layer, cos, sin, H):
    B, S, D = x.shape
    dk = D // H
    xn = _np_rmsnorm(x, layer["g1"])
    qkv = (xn @ layer["w_qkv"].T).reshape(B, S, 3, H, dk)
    q = np.transpose(qkv[:, :, 0], (0, 2, 1, 3))
    k = np.transpose(qkv[:, :, 1], (0, 2, 1, 3))
    v = np.transpose(qkv[:, :, 2], (0, 2, 1, 3))
    q, k = _np_rope(q, cos, sin), _np_rope(k, cos, sin)
    s = q @ np.transpose(k, (0, 1, 3, 2)) / sqrt(dk)
    mask = np.tril(np.ones((S, S), dtype=bool))
    s = np.where(mask, s, -np.inf)
    o = _np_softmax(s, -1) @ v
    o = np.transpose(o, (0, 2, 1, 3)).reshape(B, S, D)
    x2 = x + o @ layer["w_o"].T
    xn2 = _np_rmsnorm(x2, layer["g2"])
    w1x = xn2 @ layer["w1"].T
    w3x = xn2 @ layer["w3"].T
    silu = w1x * (1.0 / (1.0 + np.exp(-w1x)))
    return x2 + (silu * w3x) @ layer["w2"].T


def np_forward(tokens, params, H, theta):
    emb = np.asarray(params["token_embedding"], np.float64)
    x = emb[np.asarray(tokens)]
    B, S, D = x.shape
    dk = D // H
    pos = np.arange(S, dtype=np.float64)
    freqs = 1.0 / theta ** (np.arange(0, dk, 2)[: dk // 2] / dk)
    ang = pos[:, None] * freqs[None, :]
    cos, sin = np.cos(ang), np.sin(ang)
    for layer in params["layers"]:
        layer64 = {k: np.asarray(v, np.float64) for k, v in layer.items()}
        x = _np_block(x, layer64, cos, sin, H)
    xn = _np_rmsnorm(x, np.asarray(params["ln_final"], np.float64))
    return xn @ np.asarray(params["output_embedding"], np.float64).T


# --------------------------------------------------------------------------
if __name__ == "__main__":
    vocab_size = 64
    num_layers = 2
    d_model = 32
    num_heads = 4
    rope_theta = 10000.0
    batch, seq = 2, 8

    key = jax.random.PRNGKey(0)
    pkey, tkey = jax.random.split(key)
    params = init_params(pkey, vocab_size, num_layers, d_model, num_heads)
    tokens = jax.random.randint(tkey, (batch, seq), 0, vocab_size, dtype=jnp.int32)

    ref = np_forward(tokens, params, num_heads, rope_theta)

    # strict correctness check with f32 MXU inputs
    prep32 = prepare_params(params, num_heads, compute_dtype=jnp.float32)
    out32 = jax.block_until_ready(
        transformer_lm_forward(tokens, prep32, num_heads, rope_theta))
    assert out32.shape == (batch, seq, vocab_size)
    np.testing.assert_allclose(np.asarray(out32, np.float64), ref,
                               rtol=2e-2, atol=2e-2)

    # bf16 MXU path (performance configuration), looser tolerance
    prep16 = prepare_params(params, num_heads, compute_dtype=jnp.bfloat16)
    out16 = jax.block_until_ready(
        transformer_lm_forward(tokens, prep16, num_heads, rope_theta))
    np.testing.assert_allclose(np.asarray(out16, np.float64), ref,
                               rtol=1e-1, atol=1e-1)

    print("KERNEL_OK")
</pallas_src>

<mosaic_0001>
module attributes {stable_mosaic.version = 11 : i64} {
  func.func @_probe(%arg0: memref<8x16x8xf32, #tpu.memory_space<vmem>>, %arg1: memref<16x8x8xf32, #tpu.memory_space<vmem>>) attributes {dimension_semantics = [], scalar_prefetch = 0 : i64, scratch_operands = 0 : i64, tpu.core_type = #tpu.core_type<tc>} {
    %c0 = arith.constant 0 : index
    %c0_0 = arith.constant 0 : index
    %c0_1 = arith.constant 0 : index
    %0 = vector.load %arg0[%c0, %c0_0, %c0_1] : memref<8x16x8xf32, #tpu.memory_space<vmem>>, vector<8x16x8xf32>
    %1 = tpu.transpose %0, [1, 0, 2] : vector<8x16x8xf32> -> vector<16x8x8xf32>
    %c0_2 = arith.constant 0 : index
    %c0_3 = arith.constant 0 : index
    %c0_4 = arith.constant 0 : index
    %2 = vector.load %arg1[%c0_2, %c0_3, %c0_4] : memref<16x8x8xf32, #tpu.memory_space<vmem>>, vector<16x8x8xf32>
    tpu.vector_store %arg1[%c0_2, %c0_3, %c0_4], %1 {strides = array<i32>} : memref<16x8x8xf32, #tpu.memory_space<vmem>>, vector<16x8x8xf32>,
    return
  }
}

module attributes {stable_mosaic.version = 11 : i64} {
  func.func @_probe(%arg0: i32, %arg1: memref<8x128xf32, #tpu.memory_space<vmem>>, %arg2: memref<8x128xf32, #tpu.memory_space<vmem>>) attributes {dimension_semantics = [#tpu.dimension_semantics<arbitrary>], iteration_bounds = array<i64: 2>, scalar_prefetch = 0 : i64, scratch_operands = 0 : i64, tpu.core_type = #tpu.core_type<tc>, window_params = [{pipeline_mode = #tpu.pipeline_mode<synchronous>, transform_indices = @transform_0, window_bounds = array<i64: 8, 128>}, {transform_indices = @transform_1, window_bounds = array<i64: 8, 128>}]} {
    %c0 = arith.constant 0 : index
    %c0_0 = arith.constant 0 : index
    %0 = vector.load %arg1[%c0, %c0_0] : memref<8x128xf32, #tpu.memory_space<vmem>>, vector<8x128xf32>
    %cst = arith.constant 2.000000e+00 : f32
    %1 = vector.broadcast %cst : f32 to vector<8x128xf32>
    %2 = arith.mulf %0, %1 : vector<8x128xf32>
    %c0_1 = arith.constant 0 : index
    %c0_2 = arith.constant 0 : index
    %3 = vector.load %arg2[%c0_1, %c0_2] : memref<8x128xf32, #tpu.memory_space<vmem>>, vector<8x128xf32>
    tpu.vector_store %arg2[%c0_1, %c0_2], %2 {strides = array<i32>} : memref<8x128xf32, #tpu.memory_space<vmem>>, vector<8x128xf32>,
    return
  }
  func.func @transform_0(%arg0: i32) -> (i32, i32) {
    %c0_i32 = arith.constant 0 : i32
    %c0_i32_0 = arith.constant 0 : i32
    %c0_i32_1 = arith.constant 0 : i32
    return %c0_i32, %c0_i32_0 : i32, i32
  }
  func.func @transform_1(%arg0: i32) -> (i32, i32) {
    %c0_i32 = arith.constant 0 : i32
    %c0_i32_0 = arith.constant 0 : i32
    return %arg0, %c0_i32 : i32, i32
  }
}

module attributes {stable_mosaic.version = 11 : i64} {
  func.func @_qkv_rope_kernel(%arg0: i32, %arg1: i32, %arg2: memref<1x8x32xf32, #tpu.memory_space<vmem>>, %arg3: memref<1x32xf32, #tpu.memory_space<vmem>>, %arg4: memref<32x96xf32, #tpu.memory_space<vmem>>, %arg5: memref<8x8xf32, #tpu.memory_space<vmem>>, %arg6: memref<8x8xf32, #tpu.memory_space<vmem>>, %arg7: memref<1x4x8x8xf32, #tpu.memory_space<vmem>>, %arg8: memref<1x4x8x8xf32, #tpu.memory_space<vmem>>, %arg9: memref<1x4x8x8xf32, #tpu.memory_space<vmem>>) attributes {dimension_semantics = [#tpu.dimension_semantics<parallel>, #tpu.dimension_semantics<parallel>], iteration_bounds = array<i64: 2, 1>, scalar_prefetch = 0 : i64, scratch_operands = 0 : i64, tpu.core_type = #tpu.core_type<tc>, window_params = [{transform_indices = @transform_0, window_bounds = array<i64: 1, 8, 32>}, {pipeline_mode = #tpu.pipeline_mode<synchronous>, transform_indices = @transform_1, window_bounds = array<i64: 1, 32>}, {pipeline_mode = #tpu.pipeline_mode<synchronous>, transform_indices = @transform_2, window_bounds = array<i64: 32, 96>}, {transform_indices = @transform_3, window_bounds = array<i64: 8, 8>}, {transform_indices = @transform_4, window_bounds = array<i64: 8, 8>}, {transform_indices = @transform_5, window_bounds = array<i64: 1, 4, 8, 8>}, {transform_indices = @transform_6, window_bounds = array<i64: 1, 4, 8, 8>}, {transform_indices = @transform_7, window_bounds = array<i64: 1, 4, 8, 8>}]} {
    %c0 = arith.constant 0 : index
    %c0_0 = arith.constant 0 : index
    %c0_1 = arith.constant 0 : index
    %0 = vector.load %arg2[%c0, %c0_0, %c0_1] : memref<1x8x32xf32, #tpu.memory_space<vmem>>, vector<1x8x32xf32>
    %1 = vector.shape_cast %0 : vector<1x8x32xf32> to vector<8x32xf32>
    %2 = arith.mulf %1, %1 : vector<8x32xf32>
    %cst = arith.constant dense<0.000000e+00> : vector<8xf32>
    %3 = vector.multi_reduction <add>, %2, %cst [1] : vector<8x32xf32> to vector<8xf32>
    %4 = vector.shape_cast %3 : vector<8xf32> to vector<8x1xf32>
    %cst_2 = arith.constant 3.200000e+01 : f32
    %5 = vector.broadcast %cst_2 : f32 to vector<8x1xf32>
    %6 = arith.divf %4, %5 : vector<8x1xf32>
    %cst_3 = arith.constant 9.99999974E-6 : f32
    %7 = vector.broadcast %cst_3 : f32 to vector<8x1xf32>
    %8 = arith.addf %6, %7 : vector<8x1xf32>
    %9 = math.rsqrt %8 : vector<8x1xf32>
    %10 = vector.broadcast %9 : vector<8x1xf32> to vector<8x32xf32>
    %11 = arith.mulf %1, %10 : vector<8x32xf32>
    %c0_4 = arith.constant 0 : index
    %c0_5 = arith.constant 0 : index
    %12 = vector.load %arg3[%c0_4, %c0_5] : memref<1x32xf32, #tpu.memory_space<vmem>>, vector<1x32xf32>
    %13 = vector.broadcast %12 : vector<1x32xf32> to vector<8x32xf32>
    %14 = arith.mulf %11, %13 : vector<8x32xf32>
    %c0_6 = arith.constant 0 : index
    %c0_7 = arith.constant 0 : index
    %15 = vector.load %arg4[%c0_6, %c0_7] : memref<32x96xf32, #tpu.memory_space<vmem>>, vector<32x96xf32>
    %cst_8 = arith.constant dense<0.000000e+00> : vector<8x96xf32>
    %16 = tpu.matmul %14, %15, %cst_8 {dimension_numbers = #tpu.dot_dimension_numbers<[1], [0], [0], [1], [0, 0, 1, 1], [], []>} : vector<8x32xf32>, vector<32x96xf32>, vector<8x96xf32> -> vector<8x96xf32>
    %17 = vector.extract_strided_slice %16 {offsets = [0, 0], sizes = [8, 32], strides = [1, 1]} : vector<8x96xf32> to vector<8x32xf32>
    %18 = vector.extract_strided_slice %16 {offsets = [0, 32], sizes = [8, 32], strides = [1, 1]} : vector<8x96xf32> to vector<8x32xf32>
    %19 = vector.extract_strided_slice %16 {offsets = [0, 64], sizes = [8, 32], strides = [1, 1]} : vector<8x96xf32> to vector<8x32xf32>
    %c0_9 = arith.constant 0 : index
    %c0_10 = arith.constant 0 : index
    %20 = vector.load %arg5[%c0_9, %c0_10] : memref<8x8xf32, #tpu.memory_space<vmem>>, vector<8x8xf32>
    %c0_11 = arith.constant 0 : index
    %c0_12 = arith.constant 0 : index
    %21 = vector.load %arg6[%c0_11, %c0_12] : memref<8x8xf32, #tpu.memory_space<vmem>>, vector<8x8xf32>
    %22 = vector.extract_strided_slice %17 {offsets = [0, 0], sizes = [8, 8], strides = [1, 1]} : vector<8x32xf32> to vector<8x8xf32>
    %23 = vector.extract_strided_slice %17 {offsets = [0, 8], sizes = [8, 8], strides = [1, 1]} : vector<8x32xf32> to vector<8x8xf32>
    %24 = vector.extract_strided_slice %17 {offsets = [0, 16], sizes = [8, 8], strides = [1, 1]} : vector<8x32xf32> to vector<8x8xf32>
    %25 = vector.extract_strided_slice %17 {offsets = [0, 24], sizes = [8, 8], strides = [1, 1]} : vector<8x32xf32> to vector<8x8xf32>
    %26 = vector.shape_cast %22 : vector<8x8xf32> to vector<1x8x8xf32>
    %27 = vector.shape_cast %23 : vector<8x8xf32> to vector<1x8x8xf32>
    %28 = vector.shape_cast %24 : vector<8x8xf32> to vector<1x8x8xf32>
    %29 = vector.shape_cast %25 : vector<8x8xf32> to vector<1x8x8xf32>
    %30 = tpu.concatenate %26, %27, %28, %29 in 0 : vector<1x8x8xf32>, vector<1x8x8xf32>, vector<1x8x8xf32>, vector<1x8x8xf32> -> vector<4x8x8xf32>
    %31 = vector.extract_strided_slice %30 {offsets = [0, 0, 4], sizes = [4, 8, 4], strides = [1, 1, 1]} : vector<4x8x8xf32> to vector<4x8x4xf32>
    %32 = vector.extract_strided_slice %30 {offsets = [0, 0, 0], sizes = [4, 8, 4], strides = [1, 1, 1]} : vector<4x8x8xf32> to vector<4x8x4xf32>
    %33 = tpu.concatenate %31, %32 in 2 : vector<4x8x4xf32>, vector<4x8x4xf32> -> vector<4x8x8xf32>
    %34 = vector.shape_cast %20 : vector<8x8xf32> to vector<1x8x8xf32>
    %35 = vector.broadcast %34 : vector<1x8x8xf32> to vector<4x8x8xf32>
    %36 = arith.mulf %30, %35 : vector<4x8x8xf32>
    %37 = vector.shape_cast %21 : vector<8x8xf32> to vector<1x8x8xf32>
    %38 = vector.broadcast %37 : vector<1x8x8xf32> to vector<4x8x8xf32>
    %39 = arith.mulf %33, %38 : vector<4x8x8xf32>
    %40 = arith.addf %36, %39 : vector<4x8x8xf32>
    %c0_13 = arith.constant 0 : index
    %c0_14 = arith.constant 0 : index
    %c0_15 = arith.constant 0 : index
    %c0_16 = arith.constant 0 : index
    %41 = vector.load %arg7[%c0_13, %c0_14, %c0_15, %c0_16] : memref<1x4x8x8xf32, #tpu.memory_space<vmem>>, vector<1x4x8x8xf32>
    %42 = vector.shape_cast %41 : vector<1x4x8x8xf32> to vector<4x8x8xf32>
    %43 = vector.shape_cast %40 : vector<4x8x8xf32> to vector<1x4x8x8xf32>
    tpu.vector_store %arg7[%c0_13, %c0_14, %c0_15, %c0_16], %43 {strides = array<i32>} : memref<1x4x8x8xf32, #tpu.memory_space<vmem>>, vector<1x4x8x8xf32>,
    %44 = vector.extract_strided_slice %18 {offsets = [0, 0], sizes = [8, 8], strides = [1, 1]} : vector<8x32xf32> to vector<8x8xf32>
    %45 = vector.extract_strided_slice %18 {offsets = [0, 8], sizes = [8, 8], strides = [1, 1]} : vector<8x32xf32> to vector<8x8xf32>
    %46 = vector.extract_strided_slice %18 {offsets = [0, 16], sizes = [8, 8], strides = [1, 1]} : vector<8x32xf32> to vector<8x8xf32>
    %47 = vector.extract_strided_slice %18 {offsets = [0, 24], sizes = [8, 8], strides = [1, 1]} : vector<8x32xf32> to vector<8x8xf32>
    %48 = vector.shape_cast %44 : vector<8x8xf32> to vector<1x8x8xf32>
    %49 = vector.shape_cast %45 : vector<8x8xf32> to vector<1x8x8xf32>
    %50 = vector.shape_cast %46 : vector<8x8xf32> to vector<1x8x8xf32>
    %51 = vector.shape_cast %47 : vector<8x8xf32> to vector<1x8x8xf32>
    %52 = tpu.concatenate %48, %49, %50, %51 in 0 : vector<1x8x8xf32>, vector<1x8x8xf32>, vector<1x8x8xf32>, vector<1x8x8xf32> -> vector<4x8x8xf32>
    %53 = vector.extract_strided_slice %52 {offsets = [0, 0, 4], sizes = [4, 8, 4], strides = [1, 1, 1]} : vector<4x8x8xf32> to vector<4x8x4xf32>
    %54 = vector.extract_strided_slice %52 {offsets = [0, 0, 0], sizes = [4, 8, 4], strides = [1, 1, 1]} : vector<4x8x8xf32> to vector<4x8x4xf32>
    %55 = tpu.concatenate %53, %54 in 2 : vector<4x8x4xf32>, vector<4x8x4xf32> -> vector<4x8x8xf32>
    %56 = vector.shape_cast %20 : vector<8x8xf32> to vector<1x8x8xf32>
    %57 = vector.broadcast %56 : vector<1x8x8xf32> to vector<4x8x8xf32>
    %58 = arith.mulf %52, %57 : vector<4x8x8xf32>
    %59 = vector.shape_cast %21 : vector<8x8xf32> to vector<1x8x8xf32>
    %60 = vector.broadcast %59 : vector<1x8x8xf32> to vector<4x8x8xf32>
    %61 = arith.mulf %55, %60 : vector<4x8x8xf32>
    %62 = arith.addf %58, %61 : vector<4x8x8xf32>
    %c0_17 = arith.constant 0 : index
    %c0_18 = arith.constant 0 : index
    %c0_19 = arith.constant 0 : index
    %c0_20 = arith.constant 0 : index
    %63 = vector.load %arg8[%c0_17, %c0_18, %c0_19, %c0_20] : memref<1x4x8x8xf32, #tpu.memory_space<vmem>>, vector<1x4x8x8xf32>
    %64 = vector.shape_cast %63 : vector<1x4x8x8xf32> to vector<4x8x8xf32>
    %65 = vector.shape_cast %62 : vector<4x8x8xf32> to vector<1x4x8x8xf32>
    tpu.vector_store %arg8[%c0_17, %c0_18, %c0_19, %c0_20], %65 {strides = array<i32>} : memref<1x4x8x8xf32, #tpu.memory_space<vmem>>, vector<1x4x8x8xf32>,
    %66 = vector.extract_strided_slice %19 {offsets = [0, 0], sizes = [8, 8], strides = [1, 1]} : vector<8x32xf32> to vector<8x8xf32>
    %67 = vector.extract_strided_slice %19 {offsets = [0, 8], sizes = [8, 8], strides = [1, 1]} : vector<8x32xf32> to vector<8x8xf32>
    %68 = vector.extract_strided_slice %19 {offsets = [0, 16], sizes = [8, 8], strides = [1, 1]} : vector<8x32xf32> to vector<8x8xf32>
    %69 = vector.extract_strided_slice %19 {offsets = [0, 24], sizes = [8, 8], strides = [1, 1]} : vector<8x32xf32> to vector<8x8xf32>
    %70 = vector.shape_cast %66 : vector<8x8xf32> to vector<1x8x8xf32>
    %71 = vector.shape_cast %67 : vector<8x8xf32> to vector<1x8x8xf32>
    %72 = vector.shape_cast %68 : vector<8x8xf32> to vector<1x8x8xf32>
    %73 = vector.shape_cast %69 : vector<8x8xf32> to vector<1x8x8xf32>
    %74 = tpu.concatenate %70, %71, %72, %73 in 0 : vector<1x8x8xf32>, vector<1x8x8xf32>, vector<1x8x8xf32>, vector<1x8x8xf32> -> vector<4x8x8xf32>
    %c0_21 = arith.constant 0 : index
    %c0_22 = arith.constant 0 : index
    %c0_23 = arith.constant 0 : index
    %c0_24 = arith.constant 0 : index
    %75 = vector.load %arg9[%c0_21, %c0_22, %c0_23, %c0_24] : memref<1x4x8x8xf32, #tpu.memory_space<vmem>>, vector<1x4x8x8xf32>
    %76 = vector.shape_cast %75 : vector<1x4x8x8xf32> to vector<4x8x8xf32>
    %77 = vector.shape_cast %74 : vector<4x8x8xf32> to vector<1x4x8x8xf32>
    tpu.vector_store %arg9[%c0_21, %c0_22, %c0_23, %c0_24], %77 {strides = array<i32>} : memref<1x4x8x8xf32, #tpu.memory_space<vmem>>, vector<1x4x8x8xf32>,
    return
  }
  func.func @transform_0(%arg0: i32, %arg1: i32) -> (i32, i32, i32) {
    %c0_i32 = arith.constant 0 : i32
    %c0_i32_0 = arith.constant 0 : i32
    return %arg0, %arg1, %c0_i32 : i32, i32, i32
  }
  func.func @transform_1(%arg0: i32, %arg1: i32) -> (i32, i32) {
    %c0_i32 = arith.constant 0 : i32
    %c0_i32_0 = arith.constant 0 : i32
    %c0_i32_1 = arith.constant 0 : i32
    return %c0_i32, %c0_i32_0 : i32, i32
  }
  func.func @transform_2(%arg0: i32, %arg1: i32) -> (i32, i32) {
    %c0_i32 = arith.constant 0 : i32
    %c0_i32_0 = arith.constant 0 : i32
    %c0_i32_1 = arith.constant 0 : i32
    return %c0_i32, %c0_i32_0 : i32, i32
  }
  func.func @transform_3(%arg0: i32, %arg1: i32) -> (i32, i32) {
    %c0_i32 = arith.constant 0 : i32
    %c0_i32_0 = arith.constant 0 : i32
    return %arg1, %c0_i32 : i32, i32
  }
  func.func @transform_4(%arg0: i32, %arg1: i32) -> (i32, i32) {
    %c0_i32 = arith.constant 0 : i32
    %c0_i32_0 = arith.constant 0 : i32
    return %arg1, %c0_i32 : i32, i32
  }
  func.func @transform_5(%arg0: i32, %arg1: i32) -> (i32, i32, i32, i32) {
    %c0_i32 = arith.constant 0 : i32
    %c0_i32_0 = arith.constant 0 : i32
    %c0_i32_1 = arith.constant 0 : i32
    return %arg0, %c0_i32, %arg1, %c0_i32_0 : i32, i32, i32, i32
  }
  func.func @transform_6(%arg0: i32, %arg1: i32) -> (i32, i32, i32, i32) {
    %c0_i32 = arith.constant 0 : i32
    %c0_i32_0 = arith.constant 0 : i32
    %c0_i32_1 = arith.constant 0 : i32
    return %arg0, %c0_i32, %arg1, %c0_i32_0 : i32, i32, i32, i32
  }
  func.func @transform_7(%arg0: i32, %arg1: i32) -> (i32, i32, i32, i32) {
    %c0_i32 = arith.constant 0 : i32
    %c0_i32_0 = arith.constant 0 : i32
    %c0_i32_1 = arith.constant 0 : i32
    return %arg0, %c0_i32, %arg1, %c0_i32_0 : i32, i32, i32, i32
  }
}

</mosaic_0001>

<bundles_post_ra>
// kernel: tpu_custom_call.1
= control target key start
LH: loop header
LB: loop body
LE: loop exit
PB: predicated region body
PF: predicated region fallthrough
CT: control target
= control target key end

     0   :  { %vm25_vm0 = vcmask 1047556   ;;  %v272_v3 = vmov 1983009808   ;;  %v273_v5 = vmov 1934713408   ;;  %vm249_vm1 = vcmask 64512   ;;  %s480_s0 = inlined_call_operand.vmem [shape: f32[8,16,8], index: 0, kind: input, shape index: {}]   ;;  %s481_s1 = inlined_call_operand.vmem [shape: f32[16,8,8], index: 1, kind: output, shape index: {}]  }
   0x1   :  { %v8_v0 = vld [vmem:[%s480_s0] sm:$0xff]  ;;  %v10_v1 = vld [vmem:[%s480_s0 + $0x10] sm:$0xff]  ;;  %v30_v4 = vunpack.c.l.s4 %v272_v3  ;;  %v78_v6 = vunpack.c.l.s4 %v273_v5  ;;  %v9_v63 = vld [vmem:[%s480_s0 + $0x8] sm:$0xff] }
   0x2   :  { %v12_v2 = vld [vmem:[%s480_s0 + $0x20] sm:$0xff]  ;;  %v14_v7 = vld [vmem:[%s480_s0 + $0x30] sm:$0xff]  ;;  %v27_v11 = vrot.slane %v8_v0, 4  ;;  %v39_v12 = vrot.slane %v10_v1, 4 }
   0x3   :  { %v16_v8 = vld [vmem:[%s480_s0 + $0x40] sm:$0xff]  ;;  %v18_v9 = vld [vmem:[%s480_s0 + $0x50] sm:$0xff]  ;;  %v24_v10 = vrot.slane %v12_v2, 4  ;;  %v308_v15 = vunpack.c.0.s8 %v30_v4  ;;  %v37_v16 = vrot.slane %v14_v7, 4  ;;  %v311_v22 = vunpack.c.0.s8 %v78_v6  ;;  %v11_v6 = vld [vmem:[%s480_s0 + $0x18] sm:$0xff] }
   0x4   :  { %v20_v13 = vld [vmem:[%s480_s0 + $0x60] sm:$0xff]  ;;  %v22_v14 = vld [vmem:[%s480_s0 + $0x70] sm:$0xff]  ;;  %v51_v17 = vrot.slane %v16_v8, 4  ;;  %v63_v18 = vrot.slane %v18_v9, 4  ;;  %v28_v25 = vsel %vm25_vm0, %v12_v2, %v27_v11  ;;  %v40_v26 = vsel %vm25_vm0, %v14_v7, %v39_v12  ;;  %v21_v7 = vld [vmem:[%s480_s0 + $0x68] sm:$0xff] }
   0x5   :  { %v26_v19 = vsel %vm25_vm0, %v24_v10, %v8_v0  ;;  %v49_v20 = vrot.slane %v20_v13, 4  ;;  %v61_v21 = vrot.slane %v22_v14, 4  ;;  %v38_v24 = vsel %vm25_vm0, %v37_v16, %v10_v1  ;;  %v13_v0 = vld [vmem:[%s480_s0 + $0x28] sm:$0xff]  ;;  %v15_v1 = vld [vmem:[%s480_s0 + $0x38] sm:$0xff] }
   0x6   :  { %v32_v23 = vperm.slane %v26_v19, %v308_v15  ;;  %v44_v27 = vperm.slane %v38_v24, %v308_v15  ;;  %v36_v30 = vperm.slane %v28_v25, %v308_v15  ;;  %v48_v34 = vperm.slane %v40_v26, %v308_v15  ;;  %v17_v19 = vld [vmem:[%s480_s0 + $0x48] sm:$0xff]  ;;  %v19_v26 = vld [vmem:[%s480_s0 + $0x58] sm:$0xff] }
   0x7   :  { %v50_v28 = vsel %vm25_vm0, %v49_v20, %v16_v8  ;;  %v62_v29 = vsel %vm25_vm0, %v61_v21, %v18_v9  ;;  %v52_v36 = vsel %vm25_vm0, %v20_v13, %v51_v17  ;;  %v64_v37 = vsel %vm25_vm0, %v22_v14, %v63_v18  ;;  %v23_v20 = vld [vmem:[%s480_s0 + $0x78] sm:$0xff] }
   0x8   :  { %v56_v31 = vperm.slane %v50_v28, %v308_v15  ;;  %v68_v32 = vperm.slane %v62_v29, %v308_v15  ;;  %v75_v33 = vrot.slane %v32_v23, 4  ;;  %v73_v35 = vrot.slane %v44_v27, 4 }
   0x9   :  { %v87_v38 = vrot.slane %v36_v30, 4  ;;  %v60_v42 = vperm.slane %v52_v36, %v308_v15  ;;  %v72_v45 = vperm.slane %v64_v37, %v308_v15  ;;  %v85_v46 = vrot.slane %v48_v34, 4 }
   0xa   :  { %v97_v39 = vrot.slane %v68_v32, 4  ;;  %v76_v40 = vsel %vm25_vm0, %v44_v27, %v75_v33  ;;  %v99_v41 = vrot.slane %v56_v31, 4  ;;  %v74_v43 = vsel %vm25_vm0, %v73_v35, %v32_v23 }
   0xb   :  { %v84_v44 = vperm.slane %v76_v40, %v311_v22  ;;  %v80_v47 = vperm.slane %v74_v43, %v311_v22  ;;  %v88_v50 = vsel %vm25_vm0, %v48_v34, %v87_v38  ;;  %v86_v54 = vsel %vm25_vm0, %v85_v46, %v36_v30 }
   0xc   :  { %v98_v48 = vsel %vm25_vm0, %v97_v39, %v56_v31  ;;  %v100_v49 = vsel %vm25_vm0, %v68_v32, %v99_v41  ;;  %v92_v56 = vperm.slane %v86_v54, %v311_v22  ;;  %v109_v57 = vrot.slane %v72_v45, 4 }
   0xd   :  { %v104_v51 = vperm.slane %v98_v48, %v311_v22  ;;  %v108_v52 = vperm.slane %v100_v49, %v311_v22  ;;  %v127_v53 = vrot.slane %v84_v44, 4  ;;  %v123_v55 = vrot.slane %v80_v47, 4 }
   0xe   :  { %v96_v58 = vperm.slane %v88_v50, %v311_v22  ;;  %v111_v62 = vrot.slane %v60_v42, 4  ;;  %v110_v3 = vsel %vm25_vm0, %v109_v57, %v60_v42  ;;  %v131_v4 = vrot.slane %v92_v56, 4 }
   0xf   :  { %v121_v59 = vrot.slane %v104_v51, 4  ;;  %v125_v60 = vrot.slane %v108_v52, 4  ;;  %v128_v61 = vsel %vm25_vm0, %v108_v52, %v127_v53  ;;  %v124_v2 = vsel %vm25_vm0, %v104_v51, %v123_v55 }
  0x10   :  { %253 = vst.msk [vmem:[%s481_s1 + $0x18] sm:$0xff] %vm249_vm1, %v128_v61  ;;  %v135_v5 = vrot.slane %v96_v58, 4  ;;  %v116_v10 = vperm.slane %v110_v3, %v311_v22  ;;  %v112_v11 = vsel %vm25_vm0, %v72_v45, %v111_v62  ;;  %v137_v13 = vrot.slane %v13_v0, 4 }
  0x11   :  { %v122_v8 = vsel %vm25_vm0, %v121_v59, %v80_v47  ;;  %251 = vst.msk [vmem:[%s481_s1 + $0x8] sm:$0xff] %vm249_vm1, %v124_v2  ;;  %v126_v9 = vsel %vm25_vm0, %v125_v60, %v84_v44  ;;  %v120_v12 = vperm.slane %v112_v11, %v311_v22  ;;  %v139_v14 = vrot.slane %v9_v63, 4 }
  0x12   :  { %250 = vst.msk [vmem:[%s481_s1] sm:$0xff] %vm249_vm1, %v122_v8  ;;  %v149_v16 = vrot.slane %v15_v1, 4  ;;  %v129_v17 = vrot.slane %v116_v10, 4  ;;  %v132_v18 = vsel %vm25_vm0, %v116_v10, %v131_v4  ;;  %v151_v21 = vrot.slane %v11_v6, 4 }
  0x13   :  { %252 = vst.msk [vmem:[%s481_s1 + $0x10] sm:$0xff] %vm249_vm1, %v126_v9  ;;  %v161_v23 = vrot.slane %v21_v7, 4  ;;  %v133_v24 = vrot.slane %v120_v12, 4  ;;  %v136_v25 = vsel %vm25_vm0, %v120_v12, %v135_v5  ;;  %v138_v27 = vsel %vm25_vm0, %v137_v13, %v9_v63 }
  0x14   :  { %255 = vst.msk [vmem:[%s481_s1 + $0x28] sm:$0xff] %vm249_vm1, %v132_v18  ;;  %v150_v28 = vsel %vm25_vm0, %v149_v16, %v11_v6  ;;  %v130_v29 = vsel %vm25_vm0, %v129_v17, %v92_v56  ;;  %v144_v30 = vperm.slane %v138_v27, %v308_v15  ;;  %v163_v34 = vrot.slane %v17_v19, 4 }
  0x15   :  { %257 = vst.msk [vmem:[%s481_s1 + $0x38] sm:$0xff] %vm249_vm1, %v136_v25  ;;  %v156_v31 = vperm.slane %v150_v28, %v308_v15  ;;  %v162_v32 = vsel %vm25_vm0, %v161_v23, %v17_v19  ;;  %v134_v33 = vsel %vm25_vm0, %v133_v24, %v96_v58  ;;  %v173_v36 = vrot.slane %v23_v20, 4 }
  0x16   :  { %254 = vst.msk [vmem:[%s481_s1 + $0x20] sm:$0xff] %vm249_vm1, %v130_v29  ;;  %v168_v35 = vperm.slane %v162_v32, %v308_v15  ;;  %v175_v37 = vrot.slane %v19_v26, 4  ;;  %v187_v39 = vrot.slane %v144_v30, 4  ;;  %v140_v40 = vsel %vm25_vm0, %v13_v0, %v139_v14 }
  0x17   :  { %256 = vst.msk [vmem:[%s481_s1 + $0x30] sm:$0xff] %vm249_vm1, %v134_v33  ;;  %v185_v38 = vrot.slane %v156_v31, 4  ;;  %v174_v41 = vsel %vm25_vm0, %v173_v36, %v19_v26  ;;  %v148_v43 = vperm.slane %v140_v40, %v308_v15  ;;  %v152_v44 = vsel %vm25_vm0, %v15_v1, %v151_v21 }
  0x18   :  { %v211_v42 = vrot.slane %v168_v35, 4  ;;  %v180_v45 = vperm.slane %v174_v41, %v308_v15  ;;  %v188_v47 = vsel %vm25_vm0, %v156_v31, %v187_v39  ;;  %v160_v48 = vperm.slane %v152_v44, %v308_v15 }
  0x19   :  { %v186_v46 = vsel %vm25_vm0, %v185_v38, %v144_v30  ;;  %v196_v50 = vperm.slane %v188_v47, %v311_v22  ;;  %v164_v51 = vsel %vm25_vm0, %v21_v7, %v163_v34  ;;  %v176_v52 = vsel %vm25_vm0, %v23_v20, %v175_v37 }
  0x1a   :  { %v192_v49 = vperm.slane %v186_v46, %v311_v22  ;;  %v209_v53 = vrot.slane %v180_v45, 4  ;;  %v212_v54 = vsel %vm25_vm0, %v180_v45, %v211_v42  ;;  %v172_v55 = vperm.slane %v164_v51, %v308_v15 }
  0x1b   :  { %v184_v56 = vperm.slane %v176_v52, %v308_v15  ;;  %v220_v58 = vperm.slane %v212_v54, %v311_v22  ;;  %v239_v59 = vrot.slane %v196_v50, 4  ;;  %v197_v60 = vrot.slane %v160_v48, 4 }
  0x1c   :  { %v235_v57 = vrot.slane %v192_v49, 4  ;;  %v210_v61 = vsel %vm25_vm0, %v209_v53, %v168_v35  ;;  %v199_v63 = vrot.slane %v148_v43, 4  ;;  %v223_v0 = vrot.slane %v172_v55, 4 }
  0x1d   :  { %v221_v62 = vrot.slane %v184_v56, 4  ;;  %v216_v1 = vperm.slane %v210_v61, %v311_v22  ;;  %v237_v2 = vrot.slane %v220_v58, 4  ;;  %v240_v3 = vsel %vm25_vm0, %v220_v58, %v239_v59 }
  0x1e   :  { %v198_v4 = vsel %vm25_vm0, %v197_v60, %v148_v43  ;;  %261 = vst.msk [vmem:[%s481_s1 + $0x58] sm:$0xff] %vm249_vm1, %v240_v3  ;;  %v200_v6 = vsel %vm25_vm0, %v160_v48, %v199_v63  ;;  %v224_v7 = vsel %vm25_vm0, %v184_v56, %v223_v0 }
  0x1f   :  { %v204_v15 = vperm.slane %v198_v4, %v311_v22  ;;  %v222_v5 = vsel %vm25_vm0, %v221_v62, %v172_v55  ;;  %v233_v8 = vrot.slane %v216_v1, 4  ;;  %v236_v9 = vsel %vm25_vm0, %v216_v1, %v235_v57 }
  0x20   :  { %v238_v10 = vsel %vm25_vm0, %v237_v2, %v196_v50  ;;  %v228_v11 = vperm.slane %v222_v5, %v311_v22  ;;  %259 = vst.msk [vmem:[%s481_s1 + $0x48] sm:$0xff] %vm249_vm1, %v236_v9  ;;  %v208_v13 = vperm.slane %v200_v6, %v311_v22  ;;  %v232_v14 = vperm.slane %v224_v7, %v311_v22 }
  0x21   :  { %v243_v12 = vrot.slane %v204_v15, 4  ;;  %v234_v16 = vsel %vm25_vm0, %v233_v8, %v192_v49  ;;  %260 = vst.msk [vmem:[%s481_s1 + $0x50] sm:$0xff] %vm249_vm1, %v238_v10 }
  0x22   :  { %v241_v17 = vrot.slane %v228_v11, 4  ;;  %258 = vst.msk [vmem:[%s481_s1 + $0x40] sm:$0xff] %vm249_vm1, %v234_v16  ;;  %v245_v19 = vrot.slane %v232_v14, 4  ;;  %v247_v20 = vrot.slane %v208_v13, 4 }
  0x23   :  { %v244_v18 = vsel %vm25_vm0, %v228_v11, %v243_v12 }
  0x24   :  { %v242_v21 = vsel %vm25_vm0, %v241_v17, %v204_v15  ;;  %263 = vst.msk [vmem:[%s481_s1 + $0x68] sm:$0xff] %vm249_vm1, %v244_v18  ;;  %v246_v22 = vsel %vm25_vm0, %v245_v19, %v208_v13  ;;  %v248_v23 = vsel %vm25_vm0, %v232_v14, %v247_v20 }
  0x25   :  { %262 = vst.msk [vmem:[%s481_s1 + $0x60] sm:$0xff] %vm249_vm1, %v242_v21 }
  0x26   :  { %264 = vst.msk [vmem:[%s481_s1 + $0x70] sm:$0xff] %vm249_vm1, %v246_v22 }
  0x27   :  { %265 = vst.msk [vmem:[%s481_s1 + $0x78] sm:$0xff] %vm249_vm1, %v248_v23 }

// kernel: tpu_custom_call.1
= control target key start
LH: loop header
LB: loop body
LE: loop exit
PB: predicated region body
PF: predicated region fallthrough
CT: control target
= control target key end

     0   :  { %6 = vsyncpa [#allocation3], 0  ;;  %s441_s0 = inlined_call_operand.hbm [shape: f32[8,128], index: 0, kind: input, shape index: {}]   ;;  %s442_s1 = inlined_call_operand.hbm [shape: f32[16,128], index: 1, kind: output, shape index: {}]  }
   0x1   :  { %7 = vsyncpa [#allocation4], 0 }
   0x2   :  { %9 = vsyncpa [#allocation4 + $0x1], 0  ;;  %s357_s6 = smov 0   ;;  %s359_s7 = smov 0  }
   0x3   :  { %s361_s8 = smov 0   ;;  %s363_s9 = smov 0  }
   0x4 LB: > { %s378_s10 = sadd.s32 4294967295, %s344_s9   ;;  %s188_s11 = sadd.s32 4294967294, %s344_s9   ;;  %s344_s9 = sphi %s363_s9, %s448_s9   ;;  %s340_s8 = sphi %s361_s8, %s447_s8   ;;  %s336_s7 = sphi %s359_s7, %s446_s7   ;;  %s332_s6 = sphi %s357_s6, %s445_s6  }
   0x5   : > { %s382_s12 = sadd.s32 1, %s344_s9   ;;  %s43_s13 = sadd.s32 1, %s340_s8 }
   0x6   : > { %s40_s14 = ssub.s32 %s344_s9, %s382_s12  ;;  %p53_p0 = scmp.ne.s32.totalorder %s340_s8, %s336_s7 }
   0x7   : > { %p41_p1 = scmp.eq.s32.totalorder %s40_s14, 0  ;;  %p54_p2 = scmp.eq.s32.totalorder %s378_s10, 1 }
   0x8   : > { %p59_p3 = scmp.ne.s32.totalorder %s336_s7, %s332_s6  ;;  %p60_p4 = scmp.eq.s32.totalorder %s188_s11, 1 }
   0x9   : > { %s393_s15 = scalar_select %p41_p1, %s340_s8, %s43_s13  }
   0xa   : > { %p395_p5 = por %p54_p2, %p53_p0  ;;  %p399_p6 = por %p60_p4, %p59_p3 }
   0xb   : > { %p189_p7 = scmp.ge.s32.totalorder %s344_s9, 1  ;;  %p67_p8 = scmp.lt.s32.totalorder %s344_s9, 3 }
   0xc   : > { %p212_p9 = scmp.eq.s32.totalorder %s378_s10, 0  ;;  %s79_s20 = sshll.u32 %s441_s0, 4  ;;  %s80_s20 = int_to_ptr.hbm [resolvable:$true] %s79_s20 }
   0xd   : > { %p68_p10 = pnand %p189_p7, %p67_p8  ;;  %s346_s21 = smov [#allocation2]  }
   0xe   : > { %s81_s22 = sshll.u32 %s346_s21, 4  ;;  %s82_s22 = int_to_ptr.vmem [resolvable:$true] %s81_s22 }
   0xf   : > { %p204_p11 = pneg %p68_p10  ;;  %94 = sbr.rel (%p68_p10) target bundleno = 37 (0x25), region = 24 }
  0x11   : > { %p205_p12 = pnand %p212_p9, %p204_p11 }
  0x13   : > { %207 = dma.hbm_to_vmem [thread:$0]  (!%p205_p12), %s80_s20, 128, %s82_s22, [#allocation3]  }
  0x14   : > { %323 = dma.done.wait (%p212_p9), [#allocation3], 128  }
  0x15   : > { %325 = vsyncadd (%p212_p9), [#allocation3], 4294967168  ;;  %s107_s23 = sand.u32 1, %s336_s7   ;;  %s195_s24 = sshll.u32 %s378_s10, 3  ;;  %v110_v0 = vld [vmem:[#allocation2] sm:$0xff] }
  0x16   : > { %s193_s25 = sshll.u32 %s107_s23, 3  ;;  %s124_s28 = scalar_lea.hbm %s442_s1, %s195_s24  ;;  %v111_v1 = vmul.f32 2.0, %v110_v0 }
  0x17   : > { %s109_s29 = scalar_lea.vmem [#allocation5], %s193_s25  ;;  %s128_s2 = sshll.u32 %s124_s28, 4  ;;  %s129_s2 = int_to_ptr.hbm [resolvable:$true] %s128_s2 }
  0x18   : > { %s126_s30 = sshll.u32 %s109_s29, 4  ;;  %112 = vst [vmem:[%s109_s29] sm:$0xff] %v111_v1  ;;  %s114_s3 = scalar_lea.sflag [#allocation4], %s107_s23  ;;  %s127_s30 = int_to_ptr.vmem [resolvable:$true] %s126_s30 }
  0x19   : > { %s292_s4 = sshra.s32 %s129_s2, 4  ;;  %s298_s13 = scalar_lea.hbm %s442_s1, 16  ;;  %s293_s4 = int_to_ptr.hbm [resolvable:$true] %s292_s4 }
  0x1a   : > { %s294_s5 = scalar_lea.hbm %s293_s4, 8  ;;  %p299_p2 = scmp.lt.s32.totalorder %s293_s4, %s442_s1 }
  0x1b   : > { %p295_p13 = scmp.ne.s32.totalorder %s293_s4, %s294_s5  ;;  %p300_p3 = scmp.lt.s32.totalorder %s298_s13, %s294_s5 }
  0x1d   : > { %p296_p0 = pnand %p295_p13, %p395_p5  ;;  %p301_p4 = por %p300_p3, %p299_p2 }
  0x1f   : > { %p297_p1 = pneg %p296_p0 }
  0x21   : > { %p302_p7 = pnand %p301_p4, %p297_p1 }
  0x23   : > { %305 = shalt.err (!%p302_p7)
}
  0x24   : > { %202 = dma.vmem_to_hbm [thread:$0]  (%p395_p5), %s127_s30, 128, %s129_s2, %s114_s3  }
  0x25 PF: > { %p214_p8 = scmp.ge.s32.totalorder %s344_s9, 2  ;;  %s140_s19 = sand.u32 1, %s332_s6  }
  0x26   : > { %s141_s20 = scalar_lea.sflag [#allocation4], %s140_s19 }
  0x27   : > { %p209_p9 = pnand %p214_p8, %p399_p6 }
  0x29   : > { %p210_p10 = pneg %p209_p9 }
  0x2b   : > { %327 = dma.done.wait (%p210_p10), %s141_s20, 128  }
  0x2c   : > { %329 = vsyncadd (%p210_p10), %s141_s20, 4294967168  ;;  %p12_p11 = scmp.ge.s32.totalorder %s382_s12, 4   ;;  %s445_s6 = smov %s336_s7 }
  0x2d   : > { %s446_s7 = smov %s340_s8  ;;  %s447_s8 = smov %s393_s15 }
  0x2e   : > { %s448_s9 = smov %s382_s12  ;;  %14 = sbr.rel (!%p12_p11) target bundleno = 4 (0x4), region = 61 }
  0x33   :  { %147 = vsyncpa [#allocation3], 1 }
  0x34   :  { %149 = vsyncpa [#allocation3 + $0x1], 1 }
  0x35   :  { %150 = vsyncpa [#allocation4], 1 }
  0x36   :  { %152 = vsyncpa [#allocation4 + $0x1], 1 }

// kernel: tpu_custom_call.1
= control target key start
LH: loop header
LB: loop body
LE: loop exit
PB: predicated region body
PF: predicated region fallthrough
CT: control target
= control target key end

     0   :  { %s1725_s0 = inlined_call_operand.hbm [shape: f32[2,8,32], index: 0, kind: input, shape index: {}]   ;;  %s1726_s1 = inlined_call_operand.hbm [shape: f32[1,32], index: 1, kind: input, shape index: {}]   ;;  %s1727_s2 = inlined_call_operand.hbm [shape: f32[32,96], index: 2, kind: input, shape index: {}]   ;;  %s1728_s3 = inlined_call_operand.hbm [shape: f32[8,8], index: 3, kind: input, shape index: {}]   ;;  %s1729_s4 = inlined_call_operand.hbm [shape: f32[8,8], index: 4, kind: input, shape index: {}]   ;;  %s1730_s5 = inlined_call_operand.hbm [shape: f32[2,4,8,8], index: 5, kind: output, shape index: {0}]   ;;  %s1731_s6 = inlined_call_operand.hbm [shape: f32[2,4,8,8], index: 6, kind: output, shape index: {1}]   ;;  %s1732_s7 = inlined_call_operand.hbm [shape: f32[2,4,8,8], index: 7, kind: output, shape index: {2}]  }
   0x1   :  { %1738 = sst [smem:[#allocation20_spill]] %s1725_s0 }
   0x2   :  { %1739 = sst [smem:[#allocation21_spill]] %s1726_s1 }
   0x3   :  { %1740 = sst [smem:[#allocation22_spill]] %s1727_s2 }
   0x4   :  { %13 = vsyncpa [#allocation3], 0 }
   0x5   :  { %15 = vsyncpa [#allocation3 + $0x1], 0 }
   0x6   :  { %16 = vsyncpa [#allocation6], 0 }
   0x7   :  { %17 = vsyncpa [#allocation9], 0 }
   0x8   :  { %18 = vsyncpa [#allocation4], 0 }
   0x9   :  { %20 = vsyncpa [#allocation4 + $0x1], 0 }
   0xa   :  { %21 = vsyncpa [#allocation13], 0 }
   0xb   :  { %23 = vsyncpa [#allocation13 + $0x1], 0  ;;  %s1405_s24 = smov 0   ;;  %s1407_s25 = smov 0  }
   0xc   :  { %s1409_s26 = smov 0   ;;  %s1411_s27 = smov 0  }
   0xd   :  { %s1413_s28 = smov 0   ;;  %s1415_s29 = smov 0  }
   0xe LB: > { %s1436_s30 = sadd.s32 4294967295, %s1344_s29   ;;  %p879_p0 = scmp.ge.s32.totalorder %s1344_s29, 1  ;;  %s1344_s29 = sphi %s1415_s29, %s29_s29   ;;  %s1340_s28 = sphi %s1413_s28, %s1756_s28   ;;  %s1336_s27 = sphi %s1411_s27, %s1755_s27   ;;  %s1332_s26 = sphi %s1409_s26, %s1754_s26   ;;  %s1328_s25 = sphi %s1407_s25, %s1753_s25   ;;  %s1324_s24 = sphi %s1405_s24, %s1752_s24  }
   0xf   : > { %p64_p1 = scmp.eq.s32.totalorder %s1436_s30, 0  ;;  %p252_p2 = scmp.lt.s32.totalorder %s1344_s29, 3 }
  0x10   : > { %s1741_s1 = sld [smem:[#allocation21_spill]]  ;;  %p884_p4 = scmp.ge.s32.totalorder %s1344_s29, 2 }
  0x11   : > { %p1444_p3 = pnand %p879_p0, %p252_p2  ;;  %s1346_s12 = smov [#allocation5]  }
  0x12   : > { %s266_s13 = sshll.u32 %s1346_s12, 4  ;;  %s292_s16 = sshll.u32 %s1728_s3, 4  ;;  %s267_s13 = int_to_ptr.vmem [resolvable:$true] %s266_s13  ;;  %s293_s16 = int_to_ptr.hbm [resolvable:$true] %s292_s16 }
  0x13   : > { %p935_p5 = pneg %p1444_p3  ;;  %s1744_s2 = sld [smem:[#allocation22_spill]] }
  0x14   : > { %s1347_s21 = smov [#allocation8]   ;;  %s1348_s23 = smov [#allocation7]  }
  0x15   : > { %p1456_p6 = pnand %p935_p5, %p64_p1  ;;  %s294_s22 = sshll.u32 %s1347_s21, 4  ;;  %s295_s22 = int_to_ptr.vmem [resolvable:$true] %s294_s22 }
  0x16   : > { %s264_s10 = sshll.u32 %s1741_s1, 4  ;;  %s277_s8 = sshll.u32 %s1348_s23, 4  ;;  %s265_s10 = int_to_ptr.hbm [resolvable:$true] %s264_s10  ;;  %s278_s8 = int_to_ptr.vmem [resolvable:$true] %s277_s8 }
  0x17   : > { %938 = dma.hbm_to_vmem [thread:$0]  (!%p1456_p6), %s265_s10, 16, %s267_s13, [#allocation6]  }
  0x18   : > { %944 = dma.hbm_to_vmem [thread:$0]  (!%p1456_p6), %s293_s16, 128, %s295_s22, [#allocation9]  }
  0x19   : > { %s275_s20 = sshll.u32 %s1744_s2, 4  ;;  %s306_s14 = sshll.u32 %s1729_s4, 4  ;;  %s276_s20 = int_to_ptr.hbm [resolvable:$true] %s275_s20  ;;  %s307_s14 = int_to_ptr.hbm [resolvable:$true] %s306_s14 }
  0x1a   : > { %s1349_s10 = smov 128   ;;  %s1350_s13 = smov 8  }
  0x1b   : > { %941 = dma.hbm_to_vmem [thread:$0]  (!%p1456_p6), %s276_s20, 512, %s278_s8, [#allocation6], %s1349_s10, %s1349_s10, %s1350_s13  }
  0x1c   : > { %s1351_s15 = smov [#allocation10]   ;;  %s41_s18 = sadd.s32 1, %s1340_s28 }
  0x1d   : > { %s308_s16 = sshll.u32 %s1351_s15, 4  ;;  %s1733_s19 = sadd.s32 4294967294, %s1344_s29   ;;  %s309_s16 = int_to_ptr.vmem [resolvable:$true] %s308_s16 }
  0x1e   : > { %947 = dma.hbm_to_vmem [thread:$0]  (!%p1456_p6), %s307_s14, 128, %s309_s16, [#allocation9]  }
  0x1f   : > { %p43_p7 = scmp.ge.s32.totalorder %s41_s18, 2  ;;  %s50_s21 = sadd.s32 1, %s1332_s26 }
  0x20   : > { %p57_p8 = scmp.ne.s32.totalorder %s1332_s26, %s1328_s25  ;;  %p58_p9 = scmp.eq.s32.totalorder %s1344_s29, 0 }
  0x21   : > { %s1758_s18 = smov (%p43_p7, %s41_s18), 0  ;;  %p63_p10 = scmp.ne.s32.totalorder %s1328_s25, %s1324_s24 }
  0x22   : > { %s45_s20 = ssub.s32 %s1340_s28, %s1758_s18  ;;  %p183_p11 = scmp.eq.s32.totalorder %s1436_s30, 1 }
  0x23   : > { %p48_p12 = scmp.eq.s32.totalorder %s45_s20, 0  ;;  %p1489_p13 = por %p64_p1, %p63_p10 }
  0x24   : > { %p1493_p0 = por %p183_p11, %p57_p8  ;;  %p189_p2 = scmp.eq.s32.totalorder %s1733_s19, 1 }
  0x25   : > { %s1500_s23 = scalar_select %p48_p12, %s1332_s26, %s50_s21  }
  0x26   : > { %p59_p5 = por %p58_p9, %p57_p8  ;;  %p1502_p6 = por %p189_p2, %p63_p10 }
  0x27   : > { %s319_s9 = sand.u32 1, %s1332_s26   ;;  %s886_s12 = sshll.u32 %s1340_s28, 3 }
  0x28   : > { %p966_p7 = scmp.lt.s32.totalorder %s1344_s29, 2  ;;  %s885_s14 = sshll.u32 %s319_s9, 3 }
  0x29   : > { %s1748_s0 = sld [smem:[#allocation20_spill]]  ;;  %s323_s20 = scalar_lea.vmem [#allocation2], %s885_s14 }
  0x2a   : > { %s332_s1 = sshll.u32 %s323_s20, 4  ;;  %p949_p11 = pnand %p966_p7, %p59_p5  ;;  %s333_s1 = int_to_ptr.vmem [resolvable:$true] %s332_s1 }
  0x2b   : > { %s320_s21 = scalar_lea.sflag [#allocation3], %s319_s9  ;;  %s1515_s19 = sand.u32 (!%p1444_p3), 1, %s1328_s25  }
  0x2c   : > { %s888_s2 = sshll.u32 (!%p1444_p3), %s1515_s19, 3  ;;  %s344_s10 = scalar_lea.sflag (!%p1444_p3), [#allocation3], %s1515_s19 }
  0x2d   : > { %341 = sbr.rel (%p1444_p3) target bundleno = 817 (0x331), region = 40 }
  0x2f   : > { %s328_s15 = scalar_lea.hbm %s1748_s0, %s886_s12  ;;  %s347_s12 = scalar_lea.vmem (!%p1444_p3), [#allocation2], %s888_s2 }
  0x30   : > { %s330_s16 = sshll.u32 %s328_s15, 4  ;;  %s331_s16 = int_to_ptr.hbm [resolvable:$true] %s330_s16 }
  0x31   : > { %951 = dma.hbm_to_vmem [thread:$0]  (!%p949_p11), %s331_s16, 128, %s333_s1, %s320_s21  }
  0x32   : > { %1303 = dma.done.wait (%p1489_p13), %s344_s10, 128  }
  0x33   : > { %1305 = vsyncadd (%p1489_p13), %s344_s10, 4294967168 }
  0x34   : > { %1307 = dma.done.wait (%p64_p1), [#allocation6], 528  }
  0x35   : > { %1309 = vsyncadd (%p64_p1), [#allocation6], 4294966768 }
  0x36   : > { %1311 = dma.done.wait (%p64_p1), [#allocation9], 256  }
  0x37   : > { %1313 = vsyncadd (%p64_p1), [#allocation9], 4294967040  ;;  %v409_v0 = vld [vmem:[%s347_s12] sm:$0xff]  ;;  %vm411_vm0 = vcmask 261120   ;;  %v1352_v3 = vmov 32.0   ;;  %v440_v11 = vld [vmem:[#allocation7] sm:$0xff] }
  0x38   : > { %v410_v1 = vmul.f32 %v409_v0, %v409_v0  ;;  %1040 = vrcp.f32 %v1352_v3  ;;  %v443_v7 = vld [vmem:[#allocation7 + $0x18] sm:$0xff]  ;;  %v442_v8 = vld [vmem:[#allocation7 + $0x10] sm:$0xff]  ;;  %v441_v9 = vld [vmem:[#allocation7 + $0x8] sm:$0xff]  ;;  %s1353_s1 = smov 92   ;;  %s1354_s2 = smov 112   ;;  %vm503_vm5 = vcmask 31744  }
  0x39   : > { %459 = vmatpush.msra.mxu0 %v443_v7  ;;  %v1039_v23 = vld [vmem:[#allocation5] ss:$0 sm:$0xff]  ;;  %s1355_s11 = smov 120   ;;  %s1356_s17 = smov 104   ;;  %v1551_v31 = vld [vmem:[#allocation10] sm:$0xff]  ;;  %v1556_v36 = vld [vmem:[#allocation8] sm:$0xff] }
  0x3a   : > { %v412_v2 = vsel %vm411_vm0, %v410_v1, 0.0  ;;  %s1357_s9 = smov 100   ;;  %s1358_s14 = smov 32   ;;  %vm520_vm6 = vcmask 64512  }
  0x3b   : > { %413 = vadd.xlane.f32.xlu0 %v412_v2  ;;  %460 = vmatpush.msra.mxu0 %v442_v8  ;;  %s1359_s13 = smov 124   ;;  %s1360_s15 = smov 4  }
  0x3c   : > { %s1361_s16 = smov 64   ;;  %s1362_s20 = smov 96  }
  0x3d   : > { %461 = vmatpush.msra.mxu0 %v441_v9  ;;  %s1584_s21 = sshll.u32 %s1515_s19, 5  ;;  %s1612_s12 = sshll.u32 %s1336_s27, 5 }
  0x3e   : > { %v1041_v4 = vpop.eup %1040  ;;  %s1594_s10 = scalar_lea.vmem [#allocation11], %s1584_s21  ;;  %s1628_s27 = scalar_lea.vmem [#allocation14], %s1584_s21 }
  0x3f   : > { %v416_v5 = vmul.f32 32.0, %v1041_v4  ;;  %462 = vmatpush.msra.mxu0 %v440_v11  ;;  %vm420_vm1 = vweird.f32 %v1041_v4 }
  0x41   : > { %v417_v6 = vsub.f32 1.0, %v416_v5 }
  0x43   : > { %v418_v10 = vmul.f32 %v1041_v4, %v417_v6 }
  0x45   : > { %v419_v12 = vadd.f32 %v1041_v4, %v418_v10 }
  0x47   : > { %v421_v13 = vsel %vm420_vm1, %v1041_v4, %v419_v12 }
  0xae   : > { %v414_v14 = vpop.xlane.xlu0 %413 }
  0xaf   : > { %v422_v15 = vmul.f32 %v421_v13, %v414_v14 }
  0xb1   : > { %v423_v16 = vadd.f32 1e-05, %v422_v15 }
  0xb3   : > { %1042 = vrsqrt.f32 %v423_v16  ;;  %vm430_vm3 = vweird.f32 %v423_v16 }
  0xb9   : > { %v1043_v17 = vpop.eup %1042 }
  0xba   : > { %v425_v18 = vmul.f32 %v1043_v17, %v423_v16  ;;  %vm431_vm2 = vweird.f32 %v1043_v17 }
  0xbb   : > { %vm432_vm4 = vmor %vm430_vm3, %vm431_vm2 }
  0xbc   : > { %v426_v19 = vmul.f32 %v1043_v17, %v425_v18 }
  0xbe   : > { %v427_v20 = vmul.f32 0.5, %v426_v19 }
  0xc0   : > { %v428_v21 = vsub.f32 1.5, %v427_v20 }
  0xc2   : > { %v429_v22 = vmul.f32 %v1043_v17, %v428_v21 }
  0xc4   : > { %v433_v24 = vsel %vm432_vm4, %v1043_v17, %v429_v22 }
  0xc5   : > { %v434_v25 = vmul.f32 %v433_v24, %v409_v0 }
  0xc7   : > { %v439_v26 = vmul.f32 %v1039_v23, %v434_v25 }
  0xc9   : > { %896 = vmatmul.msk.f32.vlgmr.msra.gmra.mxu0 %vm411_vm0, %v439_v26 }
 0x146   : > { %v1533_v27 = vpop.f32.mrf.mxu0 }
 0x147   : > { %525 = vrot.lane.b32.xlu2 %v1533_v27, %s1353_s1  ;;  %473 = vrot.lane.b32.xlu1 %v1533_v27, %s1354_s2  ;;  %v508_v63 = vmul.f32 %v1556_v36, %v1533_v27 }
 0x148   : > { %470 = vrot.lane.b32.xlu0 %v1533_v27, %s1355_s11  ;;  %s644_s11 = scalar_lea.hbm %s1730_s5, %s1612_s12 }
 0x14f   : > { %476 = vrot.lane.b32.xlu1 %v1533_v27, %s1356_s17  ;;  %s645_s17 = sshll.u32 %s1594_s10, 4  ;;  %s646_s17 = int_to_ptr.vmem [resolvable:$true] %s645_s17 }
 0x157   : > { %537 = vrot.lane.b32.xlu1 %v1533_v27, %s1357_s9 }
 0x1a1   : > { %v526_v32 = vpop.permute.xlu2 %525 }
 0x1b9   : > { %v1540_v28 = vpop.permute.xlu1 %473 }
 0x1ba   : > { %v1542_v29 = vpop.permute.xlu0 %470  ;;  %529 = vrot.lane.b32.xlu1 %v1540_v28, %s1353_s1  ;;  %541 = vrot.lane.b32.xlu0 %v1540_v28, %s1357_s9  ;;  %v510_v14 = vmul.f32 %v1540_v28, %v1556_v36 }
 0x1bb   : > { %527 = vrot.lane.b32.xlu2 %v1542_v29, %s1353_s1  ;;  %v509_v20 = vmul.f32 %v1542_v29, %v1556_v36 }
 0x1c1   : > { %v1547_v30 = vpop.permute.xlu1 %476 }
 0x1c2   : > { %543 = vrot.lane.b32.xlu1 %v1547_v30, %s1357_s9  ;;  %v511_v8 = vmul.f32 %v1547_v30, %v1556_v36 }
 0x1c3   : > { %531 = vrot.lane.b32.xlu2 %v1547_v30, %s1353_s1  ;;  %s1214_s1 = scalar_lea.hbm %s1730_s5, 64 }
 0x1c9   : > { %v538_v33 = vpop.permute.xlu1 %537 }
 0x1ca   : > { %v549_v34 = vsel %vm503_vm5, %v526_v32, %v538_v33 }
 0x1cb   : > { %v561_v35 = vmul.f32 %v549_v34, %v1551_v31  ;;  %539 = vrot.lane.b32.xlu2 %v1542_v29, %s1357_s9  ;;  %s1622_s9 = sshll.u32 %s644_s11, 4  ;;  %s648_s9 = int_to_ptr.hbm [resolvable:$true] %s1622_s9 }
 0x1cd   : > { %569 = vrot.lane.b32.xlu0 %v561_v35, %s1358_s14 }
 0x1d3   : > { %554 = vrot.lane.b32.xlu2 %v1556_v36, %s1358_s14 }
 0x215   : > { %v528_v37 = vpop.permute.xlu2 %527 }
 0x21d   : > { %v532_v38 = vpop.permute.xlu2 %531 }
 0x225   : > { %v540_v39 = vpop.permute.xlu2 %539 }
 0x226   : > { %v550_v40 = vsel %vm503_vm5, %v528_v37, %v540_v39 }
 0x227   : > { %v562_v41 = vmul.f32 %v550_v40, %v1551_v31 }
 0x229   : > { %571 = vrot.lane.b32.xlu1 %v562_v41, %s1358_s14 }
 0x22c   : > { %v530_v42 = vpop.permute.xlu1 %529  ;;  %v542_v43 = vpop.permute.xlu0 %541 }
 0x22d   : > { %v551_v44 = vsel %vm503_vm5, %v530_v42, %v542_v43  ;;  %v555_v49 = vpop.permute.xlu2 %554 }
 0x22e   : > { %v563_v45 = vmul.f32 %v551_v44, %v1551_v31  ;;  %v557_v51 = vmul.f32 %v555_v49, %v1533_v27  ;;  %v559_v53 = vmul.f32 %v555_v49, %v1540_v28  ;;  %v558_v57 = vmul.f32 %v555_v49, %v1542_v29 }
 0x22f   : > { %v560_v2 = vmul.f32 %v555_v49, %v1547_v30 }
 0x230   : > { %573 = vrot.lane.b32.xlu2 %v563_v45, %s1358_s14 }
 0x231   : > { %479 = vrot.lane.b32.xlu1 %v1533_v27, %s1359_s13 }
 0x234   : > { %v544_v46 = vpop.permute.xlu1 %543 }
 0x235   : > { %v552_v47 = vsel %vm503_vm5, %v532_v38, %v544_v46 }
 0x236   : > { %v564_v48 = vmul.f32 %v552_v47, %v1551_v31 }
 0x238   : > { %481 = vrot.lane.b32.xlu2 %v1542_v29, %s1359_s13  ;;  %575 = vrot.lane.b32.xlu0 %v564_v48, %s1358_s14  ;;  %s622_s14 = scalar_lea.sflag [#allocation4], %s1515_s19 }
 0x239   : > { %485 = vrot.lane.b32.xlu1 %v1547_v30, %s1359_s13 }
 0x23f   : > { %v570_v50 = vpop.permute.xlu0 %569 }
 0x240   : > { %491 = vrot.lane.b32.xlu2 %v1533_v27, %s1360_s15  ;;  %483 = vrot.lane.b32.xlu0 %v1540_v28, %s1359_s13  ;;  %v581_v52 = vadd.f32 %v570_v50, %v557_v51  ;;  %s1208_s13 = sshra.s32 %s648_s9, 4  ;;  %s1209_s13 = int_to_ptr.hbm [resolvable:$true] %s1208_s13 }
 0x241   : > { %495 = vrot.lane.b32.xlu1 %v1540_v28, %s1360_s15  ;;  %p1215_p9 = scmp.lt.s32.totalorder %s1209_s13, %s1730_s5 }
 0x248   : > { %497 = vrot.lane.b32.xlu2 %v1547_v30, %s1360_s15  ;;  %493 = vrot.lane.b32.xlu0 %v1542_v29, %s1360_s15  ;;  %s1210_s15 = scalar_lea.hbm %s1209_s13, 32 }
 0x249   : > { %605 = vrot.lane.b32.xlu1 %v1533_v27, %s1361_s16  ;;  %p1211_p1 = scmp.ne.s32.totalorder %s1209_s13, %s1210_s15  ;;  %p1216_p10 = scmp.lt.s32.totalorder %s1214_s1, %s1210_s15 }
 0x24b   : > { %p1212_p3 = pnand %p1211_p1, %p1493_p0  ;;  %p1217_p12 = por %p1216_p10, %p1215_p9 }
 0x24d   : > { %p1213_p8 = pneg %p1212_p3 }
 0x24f   : > { %p1218_p13 = pnand %p1217_p12, %p1213_p8 }
 0x250   : > { %589 = vrot.lane.b32.xlu0 %v581_v52, %s1362_s20 }
 0x28a   : > { %v574_v54 = vpop.permute.xlu2 %573 }
 0x28b   : > { %v583_v55 = vadd.f32 %v574_v54, %v559_v53 }
 0x28d   : > { %593 = vrot.lane.b32.xlu2 %v583_v55, %s1362_s20 }
 0x292   : > { %v482_v56 = vpop.permute.xlu2 %481 }
 0x295   : > { %607 = vrot.lane.b32.xlu2 %v1542_v29, %s1361_s16 }
 0x29a   : > { %v492_v60 = vpop.permute.xlu2 %491 }
 0x29b   : > { %v572_v58 = vpop.permute.xlu1 %571 }
 0x29c   : > { %v582_v59 = vadd.f32 %v572_v58, %v558_v57 }
 0x29e   : > { %591 = vrot.lane.b32.xlu1 %v582_v59, %s1362_s20 }
 0x2a2   : > { %v498_v4 = vpop.permute.xlu2 %497 }
 0x2a3   : > { %v480_v61 = vpop.permute.xlu1 %479 }
 0x2a4   : > { %v504_v62 = vsel %vm503_vm5, %v480_v61, %v492_v60 }
 0x2a5   : > { %v512_v0 = vmul.f32 %v504_v62, %v1551_v31 }
 0x2a6   : > { %611 = vrot.lane.b32.xlu1 %v1547_v30, %s1361_s16 }
 0x2a7   : > { %v516_v1 = vadd.f32 %v512_v0, %v508_v63 }
 0x2a9   : > { %521 = vst.msk [vmem:[%s1594_s10] sm:$0xff] %vm520_vm6, %v516_v1 }
 0x2aa   : > { %v576_v3 = vpop.permute.xlu0 %575 }
 0x2ab   : > { %v584_v5 = vadd.f32 %v576_v3, %v560_v2  ;;  %v486_v6 = vpop.permute.xlu1 %485 }
 0x2ac   : > { %v507_v7 = vsel %vm503_vm5, %v486_v6, %v498_v4 }
 0x2ad   : > { %v515_v9 = vmul.f32 %v507_v7, %v1551_v31  ;;  %595 = vrot.lane.b32.xlu0 %v584_v5, %s1362_s20 }
 0x2af   : > { %v519_v10 = vadd.f32 %v515_v9, %v511_v8 }
 0x2b1   : > { %524 = vst.msk [vmem:[%s1594_s10 + $0x18] sm:$0xff] %vm520_vm6, %v519_v10 }
 0x2b2   : > { %v484_v11 = vpop.permute.xlu0 %483 }
 0x2b3   : > { %v496_v12 = vpop.permute.xlu1 %495 }
 0x2b4   : > { %v506_v13 = vsel %vm503_vm5, %v484_v11, %v496_v12 }
 0x2b5   : > { %v514_v15 = vmul.f32 %v506_v13, %v1551_v31  ;;  %609 = vrot.lane.b32.xlu0 %v1540_v28, %s1361_s16 }
 0x2b7   : > { %v518_v16 = vadd.f32 %v514_v15, %v510_v14 }
 0x2b9   : > { %523 = vst.msk [vmem:[%s1594_s10 + $0x10] sm:$0xff] %vm520_vm6, %v518_v16 }
 0x2ba   : > { %v494_v17 = vpop.permute.xlu0 %493 }
 0x2bb   : > { %v505_v18 = vsel %vm503_vm5, %v482_v56, %v494_v17  ;;  %v606_v19 = vpop.permute.xlu1 %605 }
 0x2bc   : > { %v513_v21 = vmul.f32 %v505_v18, %v1551_v31  ;;  %617 = vst.msk [vmem:[%s1628_s27] sm:$0xff] %vm520_vm6, %v606_v19 }
 0x2be   : > { %v517_v22 = vadd.f32 %v513_v21, %v509_v20 }
 0x2c0   : > { %522 = vst.msk [vmem:[%s1594_s10 + $0x8] sm:$0xff] %vm520_vm6, %v517_v22 }
 0x2c1   : > { %1221 = shalt.err (!%p1218_p13)
}
 0x2c2   : > { %s1734_s19 = smov 128   ;;  %s1736_s10 = smov 8   ;;  %v590_v23 = vpop.permute.xlu0 %589 }
 0x2c3   : > { %929 = dma.vmem_to_hbm [thread:$0]  (%p1493_p0), %s646_s17, 512, %s648_s9, %s622_s14, %s1734_s19, %s1734_s19, %s1736_s10  }
 0x2c4   : > { %s401_s16 = scalar_lea.vmem [#allocation12], %s1584_s21  ;;  %s662_s17 = scalar_lea.hbm %s1731_s6, %s1612_s12 }
 0x2c5   : > { %601 = vst.msk [vmem:[%s401_s16] sm:$0xff] %vm520_vm6, %v590_v23  ;;  %s663_s21 = sshll.u32 %s401_s16, 4  ;;  %s626_s9 = sand.u32 1, %s1436_s30   ;;  %s664_s21 = int_to_ptr.vmem [resolvable:$true] %s663_s21 }
 0x2c6   : > { %s665_s14 = sshll.u32 %s662_s17, 4  ;;  %s680_s2 = scalar_lea.hbm %s1732_s7, %s1612_s12  ;;  %s666_s14 = int_to_ptr.hbm [resolvable:$true] %s665_s14 }
 0x2c7   : > { %s1667_s11 = scalar_lea.sflag [#allocation13], %s626_s9  ;;  %s1236_s19 = sshra.s32 %s666_s14, 4  ;;  %s1237_s19 = int_to_ptr.hbm [resolvable:$true] %s1236_s19 }
 0x2c8   : > { %s1238_s13 = scalar_lea.hbm %s1237_s19, 32  ;;  %s1242_s17 = scalar_lea.hbm %s1731_s6, 64 }
 0x2c9   : > { %p1239_p2 = scmp.ne.s32.totalorder %s1237_s19, %s1238_s13  ;;  %p1243_p11 = scmp.lt.s32.totalorder %s1237_s19, %s1731_s6 }
 0x2ca   : > { %p1244_p1 = scmp.lt.s32.totalorder %s1242_s17, %s1238_s13 }
 0x2cb   : > { %p1240_p5 = pnand %p1239_p2, %p1493_p0 }
 0x2cc   : > { %p1245_p3 = por %p1244_p1, %p1243_p11 }
 0x2cd   : > { %p1241_p7 = pneg %p1240_p5 }
 0x2cf   : > { %p1246_p8 = pnand %p1245_p3, %p1241_p7 }
 0x2e7   : > { %v594_v24 = vpop.permute.xlu2 %593 }
 0x2e8   : > { %603 = vst.msk [vmem:[%s401_s16 + $0x10] sm:$0xff] %vm520_vm6, %v594_v24 }
 0x2ef   : > { %v608_v25 = vpop.permute.xlu2 %607 }
 0x2f0   : > { %618 = vst.msk [vmem:[%s1628_s27 + $0x8] sm:$0xff] %vm520_vm6, %v608_v25 }
 0x310   : > { %v592_v26 = vpop.permute.xlu1 %591 }
 0x311   : > { %602 = vst.msk [vmem:[%s401_s16 + $0x8] sm:$0xff] %vm520_vm6, %v592_v26 }
 0x318   : > { %v612_v27 = vpop.permute.xlu1 %611 }
 0x319   : > { %620 = vst.msk [vmem:[%s1628_s27 + $0x18] sm:$0xff] %vm520_vm6, %v612_v27 }
 0x31f   : > { %v596_v28 = vpop.permute.xlu0 %595 }
 0x320   : > { %604 = vst.msk [vmem:[%s401_s16 + $0x18] sm:$0xff] %vm520_vm6, %v596_v28 }
 0x321   : > { %1249 = shalt.err (!%p1246_p8)
}
 0x322   : > { %s1749_s12 = smov 8   ;;  %s1750_s16 = smov 128  }
 0x323   : > { %930 = dma.vmem_to_hbm [thread:$0]  (%p1493_p0), %s664_s21, 512, %s666_s14, %s1667_s11, %s1750_s16, %s1750_s16, %s1749_s12  }
 0x324   : > { %s681_s9 = sshll.u32 %s1628_s27, 4  ;;  %s683_s20 = sshll.u32 %s680_s2, 4  ;;  %s682_s9 = int_to_ptr.vmem [resolvable:$true] %s681_s9  ;;  %s684_s20 = int_to_ptr.hbm [resolvable:$true] %s683_s20 }
 0x325   : > { %s1264_s0 = sshra.s32 %s684_s20, 4  ;;  %s1270_s13 = scalar_lea.hbm %s1732_s7, 64  ;;  %s1265_s0 = int_to_ptr.hbm [resolvable:$true] %s1264_s0 }
 0x326   : > { %s1266_s19 = scalar_lea.hbm %s1265_s0, 32  ;;  %p1271_p13 = scmp.lt.s32.totalorder %s1265_s0, %s1732_s7 }
 0x327   : > { %v610_v29 = vpop.permute.xlu0 %609  ;;  %p1267_p9 = scmp.ne.s32.totalorder %s1265_s0, %s1266_s19  ;;  %p1272_p2 = scmp.lt.s32.totalorder %s1270_s13, %s1266_s19 }
 0x328   : > { %619 = vst.msk [vmem:[%s1628_s27 + $0x10] sm:$0xff] %vm520_vm6, %v610_v29 }
 0x329   : > { %p1268_p10 = pnand %p1267_p9, %p1493_p0  ;;  %p1273_p5 = por %p1272_p2, %p1271_p13 }
 0x32b   : > { %p1269_p12 = pneg %p1268_p10 }
 0x32d   : > { %p1274_p7 = pnand %p1273_p5, %p1269_p12 }
 0x32f   : > { %1277 = shalt.err (!%p1274_p7)
}
 0x330   : > { %931 = dma.vmem_to_hbm [thread:$0]  (%p1493_p0), %s682_s9, 512, %s684_s20, %s1667_s11, %s1750_s16, %s1750_s16, %s1749_s12  }
 0x331 PF: > { %s698_s27 = sand.u32 1, %s1324_s24   ;;  %p953_p11 = pnand %p884_p4, %p1502_p6 }
 0x332   : > { %s699_s14 = scalar_lea.sflag [#allocation4], %s698_s27 }
 0x333   : > { %p954_p1 = pneg %p953_p11 }
 0x335   : > { %1315 = dma.done.wait (%p954_p1), %s699_s14, 512  }
 0x336   : > { %1317 = vsyncadd (%p954_p1), %s699_s14, 4294966784  ;;  %s1751_s2 = sadd.s32 4294967294, %s1344_s29  }
 0x337   : > { %s708_s22 = sand.u32 1, %s1751_s2  }
 0x338   : > { %s709_s15 = scalar_lea.sflag [#allocation13], %s708_s22 }
 0x339   : > { %1319 = dma.done.wait (%p954_p1), %s709_s15, 1024  }
 0x33a   : > { %1321 = vsyncadd (%p954_p1), %s709_s15, 4294966272  ;;  %s29_s29 = sadd.s32 1, %s1344_s29   ;;  %s1752_s24 = smov %s1328_s25 }
 0x33b   : > { %p26_p0 = scmp.ge.s32.totalorder %s29_s29, 4   ;;  %s1753_s25 = smov %s1332_s26 }
 0x33c   : > { %s1754_s26 = smov %s1500_s23  ;;  %s1755_s27 = smov %s1340_s28 }
 0x33d   : > { %s1756_s28 = smov %s1758_s18  ;;  %28 = sbr.rel (!%p26_p0) target bundleno = 14 (0xe), region = 135 }
 0x342   :  { %725 = vsyncpa [#allocation3], 1 }
 0x343   :  { %727 = vsyncpa [#allocation3 + $0x1], 1 }
 0x344   :  { %728 = vsyncpa [#allocation6], 1 }
 0x345   :  { %729 = vsyncpa [#allocation9], 1 }
 0x346   :  { %730 = vsyncpa [#allocation4], 1 }
 0x347   :  { %732 = vsyncpa [#allocation4 + $0x1], 1 }
 0x348   :  { %733 = vsyncpa [#allocation13], 1 }
 0x349   :  { %735 = vsyncpa [#allocation13 + $0x1], 1 }

</bundles_post_ra>
